<compile_context>
chip_gen: v7x
topology: tpu7x:2x2x1
jax: 0.10.0
libtpu: 0.0.40
codegen_flags: <defaults>
</compile_context>

<pallas_src>
import jax
import jax.numpy as jnp
from jax.experimental import pallas as pl
from jax.experimental.pallas import tpu as pltpu

IN_FEATURES = 6
IN_PAD = 8                 # lane-padded feature width fed to the kernel
HIDDEN = 512
NUM_CLASSES = 17
OUT_PAD = 128              # lane-dense output width (real classes = 17)
NEG_INF = -1e30            # bias value for padded logit columns (exp -> 0)
TM_MAX = 512               # max batch tile
ALIGN = 16                 # bf16 sublane packing -> keep tiles 16-row aligned


def _round_up(n, m):
    return ((n + m - 1) // m) * m


def _choose_tile(B):
    """Pick (tile_rows, padded_batch).  Big tiles for big batches, >=2 grid
    steps for medium batches (v7x megacore), tiny aligned tile for small B."""
    b_al = _round_up(max(B, 1), ALIGN)
    if b_al >= 2 * TM_MAX:
        tm = TM_MAX                                  # grid >= 2 automatically
    elif b_al >= 64:
        tm = _round_up(-(-b_al // 2), ALIGN)         # split in two for 2 TCs
    else:
        tm = b_al                                    # tiny batch: single step
    b_pad = _round_up(b_al, tm)
    return tm, b_pad


def mlp_softmax_kernel(x_ref, w1_ref, w2_ref, w3_ref, w4_ref, b_ref, o_ref):
    # Bias rows as ref slices (views -> cheap sublane-broadcast loads).
    b1 = b_ref[0:1, :]
    b2 = b_ref[1:2, :]
    b3 = b_ref[2:3, :]
    b4 = b_ref[3:4, :OUT_PAD]

    x = x_ref[...]                       # already bf16, feature-padded to 8

    # bf16 matmul inputs, f32 accumulation via preferred_element_type; ReLU is
    # fused with the bf16 downcast (bit-identical to f32 max + cast).
    h = jnp.dot(x, w1_ref[...], preferred_element_type=jnp.float32) + b1
    h = jnp.maximum(h.astype(jnp.bfloat16), 0.0)

    h = jnp.dot(h, w2_ref[...], preferred_element_type=jnp.float32) + b2
    h = jnp.maximum(h.astype(jnp.bfloat16), 0.0)

    h = jnp.dot(h, w3_ref[...], preferred_element_type=jnp.float32) + b3
    h = jnp.maximum(h.astype(jnp.bfloat16), 0.0)

    # Final layer: keep accumulate + bias add in f32 (padded columns carry
    # -1e30, which must not be downcast to bf16).
    logits = jnp.dot(h, w4_ref[...], preferred_element_type=jnp.float32) + b4

    # Softmax over the lane-dense 128-wide class axis in f32; padded columns
    # contribute exp(-huge) == 0.
    m = jnp.max(logits, axis=-1, keepdims=True)
    e = jnp.exp(logits - m)
    denom = jnp.sum(e, axis=-1, keepdims=True)       # (TM, 1)
    inv = 1.0 / denom                                # exact; tiny tensor
    o_ref[...] = (e * inv).astype(o_ref.dtype)       # bf16 store


def neural_network_forward(x, params):
    """x: (B, 6) float32. Returns (B, 17) float32 softmax probabilities."""
    w1, w2, w3, w4p, biases = params
    B = x.shape[0]
    tm, b_pad = _choose_tile(B)

    # bf16 input, batch padded to the tile grid, features padded 6 -> 8.
    xb = jnp.zeros((b_pad, IN_PAD), jnp.bfloat16)
    xb = xb.at[:B, :IN_FEATURES].set(x.astype(jnp.bfloat16))

    grid = (b_pad // tm,)
    out = pl.pallas_call(
        mlp_softmax_kernel,
        out_shape=jax.ShapeDtypeStruct((b_pad, OUT_PAD), jnp.bfloat16),
        grid=grid,
        in_specs=[
            pl.BlockSpec((tm, IN_PAD), lambda i: (i, 0)),     # x tile
            pl.BlockSpec(w1.shape, lambda i: (0, 0)),          # VMEM-resident
            pl.BlockSpec(w2.shape, lambda i: (0, 0)),
            pl.BlockSpec(w3.shape, lambda i: (0, 0)),
            pl.BlockSpec(w4p.shape, lambda i: (0, 0)),
            pl.BlockSpec(biases.shape, lambda i: (0, 0)),
        ],
        out_specs=pl.BlockSpec((tm, OUT_PAD), lambda i: (i, 0)),
        compiler_params=pltpu.CompilerParams(
            dimension_semantics=("parallel",)),
    )(xb, w1, w2, w3, w4p, biases)

    return out[:B, :NUM_CLASSES].astype(jnp.float32)


def init_params(key):
    """Deterministic init matching PyTorch nn.Linear layer shapes.
    Weights stored as (in_features, out_features) in bf16; w1 padded on the
    input axis (6->8), w4 padded to a lane-dense 128-wide slab; biases
    coalesced into one (4, 512) f32 array."""
    dims = [(IN_FEATURES, HIDDEN), (HIDDEN, HIDDEN), (HIDDEN, HIDDEN),
            (HIDDEN, NUM_CLASSES)]
    ws, bs = [], []
    for fan_in, fan_out in dims:
        key, kw, kb = jax.random.split(key, 3)
        bound = fan_in ** -0.5
        ws.append(jax.random.uniform(kw, (fan_in, fan_out), jnp.float32,
                                     -bound, bound))
        bs.append(jax.random.uniform(kb, (fan_out,), jnp.float32,
                                     -bound, bound))

    w1 = jnp.pad(ws[0], ((0, IN_PAD - IN_FEATURES), (0, 0))
                 ).astype(jnp.bfloat16)                       # zero pad rows
    w2 = ws[1].astype(jnp.bfloat16)
    w3 = ws[2].astype(jnp.bfloat16)
    w4p = jnp.pad(ws[3], ((0, 0), (0, OUT_PAD - NUM_CLASSES))
                  ).astype(jnp.bfloat16)

    b4_row = jnp.zeros((HIDDEN,), jnp.float32)
    b4_row = b4_row.at[:NUM_CLASSES].set(bs[3])
    b4_row = b4_row.at[NUM_CLASSES:OUT_PAD].set(NEG_INF)
    biases = jnp.stack([bs[0], bs[1], bs[2], b4_row], axis=0)  # (4, 512) f32

    return (w1, w2, w3, w4p, biases)


if __name__ == "__main__":
    key = jax.random.PRNGKey(0)
    key, kx = jax.random.split(key)
    B = 8
    x = jax.random.normal(kx, (B, IN_FEATURES), jnp.float32)

    params = init_params(key)

    out = neural_network_forward(x, params)
    out = jax.block_until_ready(out)

    # sanity: shape, rows of softmax output sum to ~1 (bf16 weights + bf16
    # output store -> ~2e-3 row-sum error), all probabilities nonnegative.
    row_sums = jnp.sum(out, axis=1)
    assert out.shape == (B, NUM_CLASSES)
    assert bool(jnp.all(jnp.abs(row_sums - 1.0) < 1e-2))
    assert bool(jnp.all(out >= 0.0))

    print("KERNEL_OK")
</pallas_src>

<mosaic_0001>
module attributes {stable_mosaic.version = 11 : i64} {
  func.func @mlp_softmax_kernel(%arg0: i32, %arg1: memref<16x8xbf16, #tpu.memory_space<vmem>>, %arg2: memref<8x512xbf16, #tpu.memory_space<vmem>>, %arg3: memref<512x512xbf16, #tpu.memory_space<vmem>>, %arg4: memref<512x512xbf16, #tpu.memory_space<vmem>>, %arg5: memref<512x128xbf16, #tpu.memory_space<vmem>>, %arg6: memref<4x512xf32, #tpu.memory_space<vmem>>, %arg7: memref<16x128xbf16, #tpu.memory_space<vmem>>) attributes {dimension_semantics = [#tpu.dimension_semantics<parallel>], iteration_bounds = array<i64: 1>, scalar_prefetch = 0 : i64, scratch_operands = 0 : i64, tpu.core_type = #tpu.core_type<tc>, window_params = [{transform_indices = @transform_0, window_bounds = array<i64: 16, 8>}, {pipeline_mode = #tpu.pipeline_mode<synchronous>, transform_indices = @transform_1, window_bounds = array<i64: 8, 512>}, {pipeline_mode = #tpu.pipeline_mode<synchronous>, transform_indices = @transform_2, window_bounds = array<i64: 512, 512>}, {pipeline_mode = #tpu.pipeline_mode<synchronous>, transform_indices = @transform_3, window_bounds = array<i64: 512, 512>}, {pipeline_mode = #tpu.pipeline_mode<synchronous>, transform_indices = @transform_4, window_bounds = array<i64: 512, 128>}, {pipeline_mode = #tpu.pipeline_mode<synchronous>, transform_indices = @transform_5, window_bounds = array<i64: 4, 512>}, {transform_indices = @transform_6, window_bounds = array<i64: 16, 128>}]} {
    %c0 = arith.constant 0 : index
    %c0_0 = arith.constant 0 : index
    %0 = vector.load %arg6[%c0, %c0_0] : memref<4x512xf32, #tpu.memory_space<vmem>>, vector<1x512xf32>
    %c1 = arith.constant 1 : index
    %c0_1 = arith.constant 0 : index
    %1 = vector.load %arg6[%c1, %c0_1] : memref<4x512xf32, #tpu.memory_space<vmem>>, vector<1x512xf32>
    %c2 = arith.constant 2 : index
    %c0_2 = arith.constant 0 : index
    %2 = vector.load %arg6[%c2, %c0_2] : memref<4x512xf32, #tpu.memory_space<vmem>>, vector<1x512xf32>
    %c3 = arith.constant 3 : index
    %c0_3 = arith.constant 0 : index
    %3 = vector.load %arg6[%c3, %c0_3] : memref<4x512xf32, #tpu.memory_space<vmem>>, vector<1x128xf32>
    %c0_4 = arith.constant 0 : index
    %c0_5 = arith.constant 0 : index
    %4 = vector.load %arg1[%c0_4, %c0_5] : memref<16x8xbf16, #tpu.memory_space<vmem>>, vector<16x8xbf16>
    %c0_6 = arith.constant 0 : index
    %c0_7 = arith.constant 0 : index
    %5 = vector.load %arg2[%c0_6, %c0_7] : memref<8x512xbf16, #tpu.memory_space<vmem>>, vector<8x512xbf16>
    %cst = arith.constant dense<0.000000e+00> : vector<16x512xf32>
    %6 = tpu.matmul %4, %5, %cst {dimension_numbers = #tpu.dot_dimension_numbers<[1], [0], [0], [1], [0, 0, 1, 1], [], []>} : vector<16x8xbf16>, vector<8x512xbf16>, vector<16x512xf32> -> vector<16x512xf32>
    %7 = vector.broadcast %0 : vector<1x512xf32> to vector<16x512xf32>
    %8 = arith.addf %6, %7 : vector<16x512xf32>
    %9 = arith.truncf %8 : vector<16x512xf32> to vector<16x512xbf16>
    %cst_8 = arith.constant 0.000000e+00 : bf16
    %10 = vector.broadcast %cst_8 : bf16 to vector<16x512xbf16>
    %11 = arith.maximumf %9, %10 : vector<16x512xbf16>
    %c0_9 = arith.constant 0 : index
    %c0_10 = arith.constant 0 : index
    %12 = vector.load %arg3[%c0_9, %c0_10] : memref<512x512xbf16, #tpu.memory_space<vmem>>, vector<512x512xbf16>
    %cst_11 = arith.constant dense<0.000000e+00> : vector<16x512xf32>
    %13 = tpu.matmul %11, %12, %cst_11 {dimension_numbers = #tpu.dot_dimension_numbers<[1], [0], [0], [1], [0, 0, 1, 1], [], []>} : vector<16x512xbf16>, vector<512x512xbf16>, vector<16x512xf32> -> vector<16x512xf32>
    %14 = vector.broadcast %1 : vector<1x512xf32> to vector<16x512xf32>
    %15 = arith.addf %13, %14 : vector<16x512xf32>
    %16 = arith.truncf %15 : vector<16x512xf32> to vector<16x512xbf16>
    %cst_12 = arith.constant 0.000000e+00 : bf16
    %17 = vector.broadcast %cst_12 : bf16 to vector<16x512xbf16>
    %18 = arith.maximumf %16, %17 : vector<16x512xbf16>
    %c0_13 = arith.constant 0 : index
    %c0_14 = arith.constant 0 : index
    %19 = vector.load %arg4[%c0_13, %c0_14] : memref<512x512xbf16, #tpu.memory_space<vmem>>, vector<512x512xbf16>
    %cst_15 = arith.constant dense<0.000000e+00> : vector<16x512xf32>
    %20 = tpu.matmul %18, %19, %cst_15 {dimension_numbers = #tpu.dot_dimension_numbers<[1], [0], [0], [1], [0, 0, 1, 1], [], []>} : vector<16x512xbf16>, vector<512x512xbf16>, vector<16x512xf32> -> vector<16x512xf32>
    %21 = vector.broadcast %2 : vector<1x512xf32> to vector<16x512xf32>
    %22 = arith.addf %20, %21 : vector<16x512xf32>
    %23 = arith.truncf %22 : vector<16x512xf32> to vector<16x512xbf16>
    %cst_16 = arith.constant 0.000000e+00 : bf16
    %24 = vector.broadcast %cst_16 : bf16 to vector<16x512xbf16>
    %25 = arith.maximumf %23, %24 : vector<16x512xbf16>
    %c0_17 = arith.constant 0 : index
    %c0_18 = arith.constant 0 : index
    %26 = vector.load %arg5[%c0_17, %c0_18] : memref<512x128xbf16, #tpu.memory_space<vmem>>, vector<512x128xbf16>
    %cst_19 = arith.constant dense<0.000000e+00> : vector<16x128xf32>
    %27 = tpu.matmul %25, %26, %cst_19 {dimension_numbers = #tpu.dot_dimension_numbers<[1], [0], [0], [1], [0, 0, 1, 1], [], []>} : vector<16x512xbf16>, vector<512x128xbf16>, vector<16x128xf32> -> vector<16x128xf32>
    %28 = vector.broadcast %3 : vector<1x128xf32> to vector<16x128xf32>
    %29 = arith.addf %27, %28 : vector<16x128xf32>
    %cst_20 = arith.constant dense<0xFF800000> : vector<16xf32>
    %30 = vector.multi_reduction <maximumf>, %29, %cst_20 [1] : vector<16x128xf32> to vector<16xf32>
    %31 = vector.shape_cast %30 : vector<16xf32> to vector<16x1xf32>
    %32 = vector.broadcast %31 : vector<16x1xf32> to vector<16x128xf32>
    %33 = arith.subf %29, %32 : vector<16x128xf32>
    %34 = math.exp %33 : vector<16x128xf32>
    %cst_21 = arith.constant dense<0.000000e+00> : vector<16xf32>
    %35 = vector.multi_reduction <add>, %34, %cst_21 [1] : vector<16x128xf32> to vector<16xf32>
    %36 = vector.shape_cast %35 : vector<16xf32> to vector<16x1xf32>
    %cst_22 = arith.constant 1.000000e+00 : f32
    %37 = vector.broadcast %cst_22 : f32 to vector<16x1xf32>
    %38 = arith.divf %37, %36 : vector<16x1xf32>
    %39 = vector.broadcast %38 : vector<16x1xf32> to vector<16x128xf32>
    %40 = arith.mulf %34, %39 : vector<16x128xf32>
    %41 = arith.truncf %40 : vector<16x128xf32> to vector<16x128xbf16>
    %c0_23 = arith.constant 0 : index
    %c0_24 = arith.constant 0 : index
    %42 = vector.load %arg7[%c0_23, %c0_24] : memref<16x128xbf16, #tpu.memory_space<vmem>>, vector<16x128xbf16>
    tpu.vector_store %arg7[%c0_23, %c0_24], %41 {strides = array<i32>} : memref<16x128xbf16, #tpu.memory_space<vmem>>, vector<16x128xbf16>,
    return
  }
  func.func @transform_0(%arg0: i32) -> (i32, i32) {
    %c0_i32 = arith.constant 0 : i32
    %c0_i32_0 = arith.constant 0 : i32
    return %arg0, %c0_i32 : i32, i32
  }
  func.func @transform_1(%arg0: i32) -> (i32, i32) {
    %c0_i32 = arith.constant 0 : i32
    %c0_i32_0 = arith.constant 0 : i32
    %c0_i32_1 = arith.constant 0 : i32
    return %c0_i32, %c0_i32_0 : i32, i32
  }
  func.func @transform_2(%arg0: i32) -> (i32, i32) {
    %c0_i32 = arith.constant 0 : i32
    %c0_i32_0 = arith.constant 0 : i32
    %c0_i32_1 = arith.constant 0 : i32
    return %c0_i32, %c0_i32_0 : i32, i32
  }
  func.func @transform_3(%arg0: i32) -> (i32, i32) {
    %c0_i32 = arith.constant 0 : i32
    %c0_i32_0 = arith.constant 0 : i32
    %c0_i32_1 = arith.constant 0 : i32
    return %c0_i32, %c0_i32_0 : i32, i32
  }
  func.func @transform_4(%arg0: i32) -> (i32, i32) {
    %c0_i32 = arith.constant 0 : i32
    %c0_i32_0 = arith.constant 0 : i32
    %c0_i32_1 = arith.constant 0 : i32
    return %c0_i32, %c0_i32_0 : i32, i32
  }
  func.func @transform_5(%arg0: i32) -> (i32, i32) {
    %c0_i32 = arith.constant 0 : i32
    %c0_i32_0 = arith.constant 0 : i32
    %c0_i32_1 = arith.constant 0 : i32
    return %c0_i32, %c0_i32_0 : i32, i32
  }
  func.func @transform_6(%arg0: i32) -> (i32, i32) {
    %c0_i32 = arith.constant 0 : i32
    %c0_i32_0 = arith.constant 0 : i32
    return %arg0, %c0_i32 : i32, i32
  }
}

</mosaic_0001>

<bundles_post_ra>
// kernel: tpu_custom_call.1
= control target key start
LH: loop header
LB: loop body
LE: loop exit
PB: predicated region body
PF: predicated region fallthrough
CT: control target
= control target key end

     0   :  { %11 = vsyncpa [#allocation3], 0  ;;  %s3690_s0 = inlined_call_operand.vmem [shape: bf16[16,8], index: 0, kind: input, shape index: {}]   ;;  %s3691_s1 = inlined_call_operand.hbm [shape: bf16[8,512], index: 1, kind: input, shape index: {}]   ;;  %s3692_s2 = inlined_call_operand.hbm [shape: bf16[512,512], index: 2, kind: input, shape index: {}]   ;;  %s3693_s3 = inlined_call_operand.hbm [shape: bf16[512,512], index: 3, kind: input, shape index: {}]   ;;  %s3694_s4 = inlined_call_operand.hbm [shape: bf16[512,128], index: 4, kind: input, shape index: {}]   ;;  %s3695_s5 = inlined_call_operand.vmem [shape: f32[4,512], index: 5, kind: input, shape index: {}]   ;;  %s3696_s6 = inlined_call_operand.hbm [shape: bf16[16,128], index: 6, kind: output, shape index: {}]  }
   0x1   :  { %12 = vsyncpa [#allocation6], 0 }
   0x2   :  { %13 = vsyncpa [#allocation9], 0 }
   0x3   :  { %14 = vsyncpa [#allocation4], 0  ;;  %s3506_s21 = smov [#allocation5]   ;;  %s3388_s25 = scalar_lea.hbm %s3692_s2, 16384 }
   0x4   :  { %s32_s22 = sshll.u32 %s3506_s21, 4  ;;  %p3389_p0 = scmp.ne.s32.totalorder %s3692_s2, %s3388_s25  ;;  %s33_s22 = int_to_ptr.vmem [resolvable:$true] %s32_s22 }
   0x5   :  { %p3392_p1 = scmp.lt.u32.totalorder %s3388_s25, %s3692_s2 }
   0x7   :  { %p3394_p2 = pnand %p3392_p1, %p3389_p0 }
   0x9   :  { %3397 = shalt.err (!%p3394_p2)
}
   0xa   :  { %s3398_s30 = scalar_lea.vmem %s33_s22, 16384  ;;  %p3403_p4 = scmp.lt.s32.totalorder %s33_s22, %s33_s22 }
   0xb   :  { %p3399_p3 = scmp.ne.s32.totalorder %s33_s22, %s3398_s30  ;;  %p3404_p5 = scmp.lt.s32.totalorder %s3398_s30, %s3398_s30 }
   0xd   :  { %p3405_p6 = por %p3404_p5, %p3403_p4 }
   0xf   :  { %p3406_p7 = pnand %p3405_p6, %p3399_p3 }
  0x11   :  { %3409 = shalt.err (!%p3406_p7)
}
  0x12   :  { %s3507_s7 = smov 256   ;;  %s3508_s8 = smov 16  }
  0x13   :  { %38 = dma.hbm_to_vmem [thread:$0]  %s3692_s2, 16384, %s33_s22, [#allocation6], %s3507_s7, %s3507_s7, %s3508_s8  }
  0x14   :  { %s3509_s11 = smov [#allocation2]   ;;  %s3510_s13 = smov [#allocation7]  }
  0x15   :  { %s23_s12 = sshll.u32 %s3509_s11, 4  ;;  %s44_s14 = sshll.u32 %s3510_s13, 4  ;;  %s24_s12 = int_to_ptr.vmem [resolvable:$true] %s23_s12  ;;  %s45_s14 = int_to_ptr.vmem [resolvable:$true] %s44_s14 }
  0x16   :  { %s3410_s17 = scalar_lea.hbm %s3691_s1, 256 }
  0x17   :  { %p3411_p8 = scmp.ne.s32.totalorder %s3691_s1, %s3410_s17  ;;  %p3414_p9 = scmp.lt.u32.totalorder %s3410_s17, %s3691_s1 }
  0x19   :  { %p3416_p10 = pnand %p3414_p9, %p3411_p8 }
  0x1b   :  { %3419 = shalt.err (!%p3416_p10)
}
  0x1c   :  { %s3420_s2 = scalar_lea.vmem %s24_s12, 256  ;;  %p3425_p12 = scmp.lt.s32.totalorder %s24_s12, %s24_s12 }
  0x1d   :  { %p3421_p11 = scmp.ne.s32.totalorder %s24_s12, %s3420_s2  ;;  %p3426_p13 = scmp.lt.s32.totalorder %s3420_s2, %s3420_s2 }
  0x1f   :  { %p3427_p0 = por %p3426_p13, %p3425_p12 }
  0x21   :  { %p3428_p1 = pnand %p3427_p0, %p3421_p11 }
  0x23   :  { %3431 = shalt.err (!%p3428_p1)
}
  0x24   :  { %26 = dma.hbm_to_vmem [thread:$0]  %s3691_s1, 256, %s24_s12, [#allocation3]  }
  0x25   :  { %s3432_s26 = scalar_lea.hbm %s3693_s3, 16384 }
  0x26   :  { %p3433_p2 = scmp.ne.s32.totalorder %s3693_s3, %s3432_s26  ;;  %p3436_p3 = scmp.lt.u32.totalorder %s3432_s26, %s3693_s3 }
  0x28   :  { %p3438_p4 = pnand %p3436_p3, %p3433_p2 }
  0x2a   :  { %3441 = shalt.err (!%p3438_p4)
}
  0x2b   :  { %s3442_s9 = scalar_lea.vmem %s45_s14, 16384  ;;  %p3447_p6 = scmp.lt.s32.totalorder %s45_s14, %s45_s14 }
  0x2c   :  { %p3443_p5 = scmp.ne.s32.totalorder %s45_s14, %s3442_s9  ;;  %p3448_p7 = scmp.lt.s32.totalorder %s3442_s9, %s3442_s9 }
  0x2e   :  { %p3449_p8 = por %p3448_p7, %p3447_p6 }
  0x30   :  { %p3450_p9 = pnand %p3449_p8, %p3443_p5 }
  0x32   :  { %3453 = shalt.err (!%p3450_p9)
}
  0x33   :  { %50 = dma.hbm_to_vmem [thread:$0]  %s3693_s3, 16384, %s45_s14, [#allocation6], %s3507_s7, %s3507_s7, %s3508_s8  }
  0x34   :  { %s3511_s11 = smov [#allocation8]   ;;  %s3454_s16 = scalar_lea.hbm %s3694_s4, 4096 }
  0x35   :  { %s56_s12 = sshll.u32 %s3511_s11, 4  ;;  %p3455_p10 = scmp.ne.s32.totalorder %s3694_s4, %s3454_s16  ;;  %s57_s12 = int_to_ptr.vmem [resolvable:$true] %s56_s12 }
  0x36   :  { %p3458_p11 = scmp.lt.u32.totalorder %s3454_s16, %s3694_s4 }
  0x38   :  { %p3460_p12 = pnand %p3458_p11, %p3455_p10 }
  0x3a   :  { %3463 = shalt.err (!%p3460_p12)
}
  0x3b   :  { %s3464_s21 = scalar_lea.vmem %s57_s12, 4096  ;;  %p3469_p0 = scmp.lt.s32.totalorder %s57_s12, %s57_s12 }
  0x3c   :  { %p3465_p13 = scmp.ne.s32.totalorder %s57_s12, %s3464_s21  ;;  %p3470_p1 = scmp.lt.s32.totalorder %s3464_s21, %s3464_s21 }
  0x3e   :  { %p3471_p2 = por %p3470_p1, %p3469_p0 }
  0x40   :  { %p3472_p3 = pnand %p3471_p2, %p3465_p13 }
  0x42   :  { %3475 = shalt.err (!%p3472_p3)
}
  0x43   :  { %s3512_s3 = smov 64   ;;  %s3513_s7 = smov 4  }
  0x44   :  { %62 = dma.hbm_to_vmem [thread:$0]  %s3694_s4, 4096, %s57_s12, [#allocation9], %s3512_s3, %s3512_s3, %s3513_s7  }
  0x45   :  { %3498 = dma.done.wait [#allocation3], 256  }
  0x46   :  { %3499 = vsyncadd [#allocation3], 4294967040 }
  0x47   :  { %3500 = dma.done.wait [#allocation6], 32768  }
  0x48   :  { %3501 = vsyncadd [#allocation6], 4294934528 }
  0x49   :  { %3502 = dma.done.wait [#allocation9], 4096  }
  0x4a   :  { %3503 = vsyncadd [#allocation9], 4294963200  ;;  %v3514_v0 = vmov 0   ;;  %v86_v1 = vld [vmem:[#allocation2] sm:$0xff]  ;;  %vm128_vm0 = vcmask 1043456   ;;  %v87_v4 = vld [vmem:[#allocation2 + $0x8] sm:$0xff] }
  0x4b   :  { %173 = vmatprep.mubr.bf16.mxu0 %v3514_v0  ;;  %216 = vmatprep.mubr.bf16.mxu1 %v3514_v0  ;;  %v2568_v2 = vcombine.high %v86_v1, %v86_v1  ;;  %v2567_v3 = vcombine.low %v86_v1, %v86_v1  ;;  %v2961_v5 = vld [vmem:[%s3690_s0] sm:$0xff]   ;;  %v2570_v6 = vcombine.high %v87_v4, %v87_v4  ;;  %vm124_vm1 = vcmask 64512   ;;  %v2969_v12 = vld [vmem:[#allocation5 + $0xc] ss:$16 sps:$4 sm:$0xff]   ;;  %v2967_v13 = vld [vmem:[#allocation5 + $0x8] ss:$16 sps:$4 sm:$0xff]  }
  0x4c   :  { %v2569_v7 = vcombine.low %v87_v4, %v87_v4  ;;  %v2966_v8 = vld [vmem:[#allocation5 + $0x4] ss:$16 sps:$4 sm:$0xff]   ;;  %v2964_v10 = vld [vmem:[#allocation5] ss:$16 sps:$4 sm:$0xff]   ;;  %v2975_v15 = vld [vmem:[#allocation5 + $0x2c] ss:$16 sps:$4 sm:$0xff]  }
  0x4d   :  { %2571 = vmatprep.subr.msk.bf16.mxu0 %vm128_vm0, %v2568_v2  ;;  %v130_v9 = vsel %vm128_vm0, %v2567_v3, 0  ;;  %2573 = vmatprep.subr.msk.bf16.mxu1 %vm128_vm0, %v2570_v6  ;;  %v2972_v14 = vld [vmem:[#allocation5 + $0x24] ss:$16 sps:$4 sm:$0xff]   ;;  %v2970_v16 = vld [vmem:[#allocation5 + $0x20] ss:$16 sps:$4 sm:$0xff]  }
  0x4e   :  { %142 = vmatpush1.bf16.msra.mxu0 %v130_v9  ;;  %v136_v11 = vsel %vm128_vm0, %v2569_v7, 0  ;;  %v2973_v17 = vld [vmem:[#allocation5 + $0x28] ss:$16 sps:$4 sm:$0xff]   ;;  %v2978_v18 = vld [vmem:[#allocation5 + $0x44] ss:$16 sps:$4 sm:$0xff]  }
  0x4f   :  { %185 = vmatpush1.bf16.msra.mxu1 %v136_v11  ;;  %1024 = vmatprep.subr.bf16.mxu0 %v2966_v8  ;;  %v2981_v19 = vld [vmem:[#allocation5 + $0x4c] ss:$16 sps:$4 sm:$0xff]   ;;  %v2976_v20 = vld [vmem:[#allocation5 + $0x40] ss:$16 sps:$4 sm:$0xff]   ;;  %v2979_v21 = vld [vmem:[#allocation5 + $0x48] ss:$16 sps:$4 sm:$0xff]  }
  0x50   :  { %1110 = vmatprep.subr.bf16.mxu1 %v2969_v12  ;;  %v2984_v22 = vld [vmem:[#allocation5 + $0x64] ss:$16 sps:$4 sm:$0xff]   ;;  %v2987_v23 = vld [vmem:[#allocation5 + $0x6c] ss:$16 sps:$4 sm:$0xff]   ;;  %v2982_v24 = vld [vmem:[#allocation5 + $0x60] ss:$16 sps:$4 sm:$0xff]  }
  0x51   :  { %2572 = vmatmul.mubr.msk.bf16.vlgmr.msra.gmra.mrb[0].mxu0 %vm124_vm1, %v2961_v5  ;;  %v2985_v25 = vld [vmem:[#allocation5 + $0x68] ss:$16 sps:$4 sm:$0xff]   ;;  %v2990_v26 = vld [vmem:[#allocation5 + $0x84] ss:$16 sps:$4 sm:$0xff]   ;;  %v2993_v27 = vld [vmem:[#allocation5 + $0x8c] ss:$16 sps:$4 sm:$0xff]  }
  0x52   :  { %2574 = vmatmul.mubr.msk.bf16.vlgmr.msra.gmra.mrb[0].mxu1 %vm124_vm1, %v2961_v5  ;;  %1025 = vmatpush1.bf16.msra.mxu0 %v2964_v10  ;;  %v2988_v28 = vld [vmem:[#allocation5 + $0x80] ss:$16 sps:$4 sm:$0xff]   ;;  %v2991_v29 = vld [vmem:[#allocation5 + $0x88] ss:$16 sps:$4 sm:$0xff]   ;;  %v2996_v30 = vld [vmem:[#allocation5 + $0xa4] ss:$16 sps:$4 sm:$0xff]  }
  0x53   :  { %1111 = vmatpush1.bf16.msra.mxu1 %v2967_v13  ;;  %1026 = vmatprep.subr.bf16.mxu0 %v2972_v14  ;;  %v2999_v31 = vld [vmem:[#allocation5 + $0xac] ss:$16 sps:$4 sm:$0xff]   ;;  %v2994_v32 = vld [vmem:[#allocation5 + $0xa0] ss:$16 sps:$4 sm:$0xff]   ;;  %v2997_v33 = vld [vmem:[#allocation5 + $0xa8] ss:$16 sps:$4 sm:$0xff]   ;;  %v89_v13 = vlaneseq }
  0x54   :  { %1112 = vmatprep.subr.bf16.mxu1 %v2975_v15  ;;  %v3002_v34 = vld [vmem:[#allocation5 + $0xc4] ss:$16 sps:$4 sm:$0xff]   ;;  %v3005_v35 = vld [vmem:[#allocation5 + $0xcc] ss:$16 sps:$4 sm:$0xff]   ;;  %v3000_v36 = vld [vmem:[#allocation5 + $0xc0] ss:$16 sps:$4 sm:$0xff]  }
  0x55   :  { %v3003_v37 = vld [vmem:[#allocation5 + $0xc8] ss:$16 sps:$4 sm:$0xff]   ;;  %v3008_v38 = vld [vmem:[#allocation5 + $0xe4] ss:$16 sps:$4 sm:$0xff]   ;;  %v3011_v39 = vld [vmem:[#allocation5 + $0xec] ss:$16 sps:$4 sm:$0xff]  }
  0x56   :  { %1027 = vmatpush1.bf16.msra.mxu0 %v2970_v16  ;;  %v3006_v40 = vld [vmem:[#allocation5 + $0xe0] ss:$16 sps:$4 sm:$0xff]   ;;  %v3009_v41 = vld [vmem:[#allocation5 + $0xe8] ss:$16 sps:$4 sm:$0xff]   ;;  %v3014_v42 = vld [vmem:[#allocation5 + $0x104] ss:$16 sps:$4 sm:$0xff]  }
  0x57   :  { %1113 = vmatpush1.bf16.msra.mxu1 %v2973_v17  ;;  %1028 = vmatprep.subr.bf16.mxu0 %v2978_v18  ;;  %v3017_v43 = vld [vmem:[#allocation5 + $0x10c] ss:$16 sps:$4 sm:$0xff]   ;;  %v3012_v44 = vld [vmem:[#allocation5 + $0x100] ss:$16 sps:$4 sm:$0xff]   ;;  %v3015_v45 = vld [vmem:[#allocation5 + $0x108] ss:$16 sps:$4 sm:$0xff]  }
  0x58   :  { %1114 = vmatprep.subr.bf16.mxu1 %v2981_v19  ;;  %v3020_v46 = vld [vmem:[#allocation5 + $0x124] ss:$16 sps:$4 sm:$0xff]   ;;  %v3018_v47 = vld [vmem:[#allocation5 + $0x120] ss:$16 sps:$4 sm:$0xff]   ;;  %v3023_v48 = vld [vmem:[#allocation5 + $0x12c] ss:$16 sps:$4 sm:$0xff]  }
  0x59   :  { %v3021_v49 = vld [vmem:[#allocation5 + $0x128] ss:$16 sps:$4 sm:$0xff]   ;;  %v3026_v50 = vld [vmem:[#allocation5 + $0x144] ss:$16 sps:$4 sm:$0xff]   ;;  %v3029_v51 = vld [vmem:[#allocation5 + $0x14c] ss:$16 sps:$4 sm:$0xff]  }
  0x5a   :  { %1029 = vmatpush1.bf16.msra.mxu0 %v2976_v20  ;;  %v3024_v52 = vld [vmem:[#allocation5 + $0x140] ss:$16 sps:$4 sm:$0xff]   ;;  %v3027_v53 = vld [vmem:[#allocation5 + $0x148] ss:$16 sps:$4 sm:$0xff]   ;;  %v3032_v54 = vld [vmem:[#allocation5 + $0x164] ss:$16 sps:$4 sm:$0xff]  }
  0x5b   :  { %1115 = vmatpush1.bf16.msra.mxu1 %v2979_v21  ;;  %1030 = vmatprep.subr.bf16.mxu0 %v2984_v22  ;;  %v3035_v55 = vld [vmem:[#allocation5 + $0x16c] ss:$16 sps:$4 sm:$0xff]   ;;  %v3030_v56 = vld [vmem:[#allocation5 + $0x160] ss:$16 sps:$4 sm:$0xff]   ;;  %v3033_v57 = vld [vmem:[#allocation5 + $0x168] ss:$16 sps:$4 sm:$0xff]  }
  0x5c   :  { %1116 = vmatprep.subr.bf16.mxu1 %v2987_v23  ;;  %v3038_v58 = vld [vmem:[#allocation5 + $0x184] ss:$16 sps:$4 sm:$0xff]   ;;  %v3041_v59 = vld [vmem:[#allocation5 + $0x18c] ss:$16 sps:$4 sm:$0xff]   ;;  %v3036_v60 = vld [vmem:[#allocation5 + $0x180] ss:$16 sps:$4 sm:$0xff]  }
  0x5d   :  { %v3039_v61 = vld [vmem:[#allocation5 + $0x188] ss:$16 sps:$4 sm:$0xff]   ;;  %v3044_v62 = vld [vmem:[#allocation5 + $0x1a4] ss:$16 sps:$4 sm:$0xff]   ;;  %v3047_v63 = vld [vmem:[#allocation5 + $0x1ac] ss:$16 sps:$4 sm:$0xff]  }
  0x5e   :  { %1031 = vmatpush1.bf16.msra.mxu0 %v2982_v24  ;;  %v3042_v1 = vld [vmem:[#allocation5 + $0x1a0] ss:$16 sps:$4 sm:$0xff]   ;;  %v3045_v2 = vld [vmem:[#allocation5 + $0x1a8] ss:$16 sps:$4 sm:$0xff]   ;;  %v3050_v3 = vld [vmem:[#allocation5 + $0x1c4] ss:$16 sps:$4 sm:$0xff]  }
  0x5f   :  { %1117 = vmatpush1.bf16.msra.mxu1 %v2985_v25  ;;  %1032 = vmatprep.subr.bf16.mxu0 %v2990_v26  ;;  %v3053_v4 = vld [vmem:[#allocation5 + $0x1cc] ss:$16 sps:$4 sm:$0xff]   ;;  %v3048_v5 = vld [vmem:[#allocation5 + $0x1c0] ss:$16 sps:$4 sm:$0xff]   ;;  %v3051_v6 = vld [vmem:[#allocation5 + $0x1c8] ss:$16 sps:$4 sm:$0xff]  }
  0x60   :  { %1118 = vmatprep.subr.bf16.mxu1 %v2993_v27  ;;  %v3056_v7 = vld [vmem:[#allocation5 + $0x1e4] ss:$16 sps:$4 sm:$0xff]   ;;  %v3059_v8 = vld [vmem:[#allocation5 + $0x1ec] ss:$16 sps:$4 sm:$0xff]   ;;  %v3054_v9 = vld [vmem:[#allocation5 + $0x1e0] ss:$16 sps:$4 sm:$0xff]  }
  0x61   :  { %v3057_v10 = vld [vmem:[#allocation5 + $0x1e8] ss:$16 sps:$4 sm:$0xff]   ;;  %v3062_v11 = vld [vmem:[#allocation5 + $0x204] ss:$16 sps:$4 sm:$0xff]   ;;  %v3065_v12 = vld [vmem:[#allocation5 + $0x20c] ss:$16 sps:$4 sm:$0xff]  }
  0x62   :  { %1033 = vmatpush1.bf16.msra.mxu0 %v2988_v28  ;;  %v90_v14 = vshrl.u32 %v89_v13, 7  ;;  %v78_v18 = vld [vmem:[%s3695_s5] ss:$4 sm:$0xf] }
  0x63   :  { %1119 = vmatpush1.bf16.msra.mxu1 %v2991_v29  ;;  %1034 = vmatprep.subr.bf16.mxu0 %v2996_v30  ;;  %v3105_v13 = vld [vmem:[#allocation5 + $0x2e8] ss:$16 sps:$4 sm:$0xff]  }
  0x64   :  { %1120 = vmatprep.subr.bf16.mxu1 %v2999_v31  ;;  %v3613_v15 = vsub.s32 2, %v90_v14  ;;  %v3615_v16 = vsub.s32 0, %v90_v14  ;;  %v3617_v17 = vsub.s32 3, %v90_v14  ;;  %v3622_v19 = vsub.s32 1, %v90_v14  ;;  %v3110_v14 = vld [vmem:[#allocation5 + $0x304] ss:$16 sps:$4 sm:$0xff]  }
  0x66   :  { %1035 = vmatpush1.bf16.msra.mxu0 %v2994_v32  ;;  %v100_v20 = vrot.slane %v78_v18, %v3613_v15  ;;  %v92_v21 = vrot.slane %v78_v18, %v3615_v16  ;;  %v104_v22 = vrot.slane %v78_v18, %v3617_v17  ;;  %v96_v24 = vrot.slane %v78_v18, %v3622_v19  ;;  %v3113_v18 = vld [vmem:[#allocation5 + $0x30c] ss:$16 sps:$4 sm:$0xff]  }
  0x67   :  { %1121 = vmatpush1.bf16.msra.mxu1 %v2997_v33  ;;  %1036 = vmatprep.subr.bf16.mxu0 %v3002_v34 }
  0x68   :  { %1122 = vmatprep.subr.bf16.mxu1 %v3005_v35 }
  0x6a   :  { %1037 = vmatpush1.bf16.msra.mxu0 %v3000_v36 }
  0x6b   :  { %1123 = vmatpush1.bf16.msra.mxu1 %v3003_v37  ;;  %1038 = vmatprep.subr.bf16.mxu0 %v3008_v38 }
  0x6c   :  { %1124 = vmatprep.subr.bf16.mxu1 %v3011_v39 }
  0x6e   :  { %1039 = vmatpush1.bf16.msra.mxu0 %v3006_v40 }
  0x6f   :  { %1125 = vmatpush1.bf16.msra.mxu1 %v3009_v41  ;;  %1040 = vmatprep.subr.bf16.mxu0 %v3014_v42 }
  0x70   :  { %1126 = vmatprep.subr.bf16.mxu1 %v3017_v43 }
  0x72   :  { %1041 = vmatpush1.bf16.msra.mxu0 %v3012_v44 }
  0x73   :  { %1127 = vmatpush1.bf16.msra.mxu1 %v3015_v45  ;;  %1042 = vmatprep.subr.bf16.mxu0 %v3020_v46  ;;  %v3060_v45 = vld [vmem:[#allocation5 + $0x200] ss:$16 sps:$4 sm:$0xff]   ;;  %v3063_v46 = vld [vmem:[#allocation5 + $0x208] ss:$16 sps:$4 sm:$0xff]  }
  0x74   :  { %1128 = vmatprep.subr.bf16.mxu1 %v3023_v48  ;;  %v3068_v48 = vld [vmem:[#allocation5 + $0x224] ss:$16 sps:$4 sm:$0xff]  }
  0x76   :  { %1043 = vmatpush1.bf16.msra.mxu0 %v3018_v47 }
  0x77   :  { %1129 = vmatpush1.bf16.msra.mxu1 %v3021_v49  ;;  %1044 = vmatprep.subr.bf16.mxu0 %v3026_v50  ;;  %v3071_v49 = vld [vmem:[#allocation5 + $0x22c] ss:$16 sps:$4 sm:$0xff]  }
  0x78   :  { %1130 = vmatprep.subr.bf16.mxu1 %v3029_v51  ;;  %v3066_v51 = vld [vmem:[#allocation5 + $0x220] ss:$16 sps:$4 sm:$0xff]  }
  0x7a   :  { %1045 = vmatpush1.bf16.msra.mxu0 %v3024_v52  ;;  %v3069_v52 = vld [vmem:[#allocation5 + $0x228] ss:$16 sps:$4 sm:$0xff]  }
  0x7b   :  { %1131 = vmatpush1.bf16.msra.mxu1 %v3027_v53  ;;  %1046 = vmatprep.subr.bf16.mxu0 %v3032_v54  ;;  %v3074_v53 = vld [vmem:[#allocation5 + $0x244] ss:$16 sps:$4 sm:$0xff]   ;;  %v3077_v54 = vld [vmem:[#allocation5 + $0x24c] ss:$16 sps:$4 sm:$0xff]  }
  0x7c   :  { %1132 = vmatprep.subr.bf16.mxu1 %v3035_v55  ;;  %v3072_v55 = vld [vmem:[#allocation5 + $0x240] ss:$16 sps:$4 sm:$0xff]  }
  0x7e   :  { %1047 = vmatpush1.bf16.msra.mxu0 %v3030_v56  ;;  %v3075_v56 = vld [vmem:[#allocation5 + $0x248] ss:$16 sps:$4 sm:$0xff]  }
  0x7f   :  { %1133 = vmatpush1.bf16.msra.mxu1 %v3033_v57  ;;  %1048 = vmatprep.subr.bf16.mxu0 %v3038_v58  ;;  %v3080_v57 = vld [vmem:[#allocation5 + $0x264] ss:$16 sps:$4 sm:$0xff]   ;;  %v3083_v58 = vld [vmem:[#allocation5 + $0x26c] ss:$16 sps:$4 sm:$0xff]  }
  0x80   :  { %1134 = vmatprep.subr.bf16.mxu1 %v3041_v59  ;;  %v3078_v59 = vld [vmem:[#allocation5 + $0x260] ss:$16 sps:$4 sm:$0xff]  }
  0x82   :  { %1049 = vmatpush1.bf16.msra.mxu0 %v3036_v60  ;;  %v3081_v60 = vld [vmem:[#allocation5 + $0x268] ss:$16 sps:$4 sm:$0xff]  }
  0x83   :  { %1135 = vmatpush1.bf16.msra.mxu1 %v3039_v61  ;;  %1050 = vmatprep.subr.bf16.mxu0 %v3044_v62  ;;  %v3086_v61 = vld [vmem:[#allocation5 + $0x284] ss:$16 sps:$4 sm:$0xff]   ;;  %v3089_v62 = vld [vmem:[#allocation5 + $0x28c] ss:$16 sps:$4 sm:$0xff]  }
  0x84   :  { %1136 = vmatprep.subr.bf16.mxu1 %v3047_v63  ;;  %v3084_v63 = vld [vmem:[#allocation5 + $0x280] ss:$16 sps:$4 sm:$0xff]  }
  0x86   :  { %1051 = vmatpush1.bf16.msra.mxu0 %v3042_v1  ;;  %v3087_v1 = vld [vmem:[#allocation5 + $0x288] ss:$16 sps:$4 sm:$0xff]  }
  0x87   :  { %1137 = vmatpush1.bf16.msra.mxu1 %v3045_v2  ;;  %1052 = vmatprep.subr.bf16.mxu0 %v3050_v3  ;;  %v3092_v2 = vld [vmem:[#allocation5 + $0x2a4] ss:$16 sps:$4 sm:$0xff]   ;;  %v3095_v3 = vld [vmem:[#allocation5 + $0x2ac] ss:$16 sps:$4 sm:$0xff]  }
  0x88   :  { %1138 = vmatprep.subr.bf16.mxu1 %v3053_v4  ;;  %v3090_v4 = vld [vmem:[#allocation5 + $0x2a0] ss:$16 sps:$4 sm:$0xff]  }
  0x8a   :  { %1053 = vmatpush1.bf16.msra.mxu0 %v3048_v5  ;;  %v3093_v5 = vld [vmem:[#allocation5 + $0x2a8] ss:$16 sps:$4 sm:$0xff]  }
  0x8b   :  { %1139 = vmatpush1.bf16.msra.mxu1 %v3051_v6  ;;  %1054 = vmatprep.subr.bf16.mxu0 %v3056_v7  ;;  %v3098_v6 = vld [vmem:[#allocation5 + $0x2c4] ss:$16 sps:$4 sm:$0xff]   ;;  %v3101_v7 = vld [vmem:[#allocation5 + $0x2cc] ss:$16 sps:$4 sm:$0xff]  }
  0x8c   :  { %1140 = vmatprep.subr.bf16.mxu1 %v3059_v8  ;;  %v3096_v8 = vld [vmem:[#allocation5 + $0x2c0] ss:$16 sps:$4 sm:$0xff]  }
  0x8e   :  { %1055 = vmatpush1.bf16.msra.mxu0 %v3054_v9  ;;  %v3099_v9 = vld [vmem:[#allocation5 + $0x2c8] ss:$16 sps:$4 sm:$0xff]  }
  0x8f   :  { %1141 = vmatpush1.bf16.msra.mxu1 %v3057_v10  ;;  %1067 = vmatprep.subr.bf16.mxu0 %v3062_v11  ;;  %v3104_v10 = vld [vmem:[#allocation5 + $0x2e4] ss:$16 sps:$4 sm:$0xff]   ;;  %v3107_v11 = vld [vmem:[#allocation5 + $0x2ec] ss:$16 sps:$4 sm:$0xff]  }
  0x90   :  { %1153 = vmatprep.subr.bf16.mxu1 %v3065_v12  ;;  %v3102_v12 = vld [vmem:[#allocation5 + $0x2e0] ss:$16 sps:$4 sm:$0xff]  }
 0x124   :  { %v175_v23 = vpop.f32.mrb[0].mxu0 }
 0x125   :  { %v177_v25 = vpop.f32.mrb[1].mxu0  ;;  %v218_v26 = vpop.f32.mrb[0].mxu1  ;;  %v176_v30 = vadd.f32 %v175_v23, %v92_v21  ;;  %v3119_v23 = vld [vmem:[#allocation5 + $0x32c] ss:$16 sps:$4 sm:$0xff]  }
 0x126   :  { %v179_v27 = vpop.f32.mrb[2].mxu0  ;;  %v3628_v28 = vadd.f32 %v218_v26, %v100_v20  ;;  %v220_v29 = vpop.f32.mrb[1].mxu1  ;;  %v178_v35 = vadd.f32 %v177_v25, %v96_v24  ;;  %v3117_v25 = vld [vmem:[#allocation5 + $0x328] ss:$16 sps:$4 sm:$0xff]   ;;  %v3122_v26 = vld [vmem:[#allocation5 + $0x344] ss:$16 sps:$4 sm:$0xff]  }
 0x127   :  { %v180_v31 = vadd.f32 %v179_v27, %v92_v21  ;;  %v181_v32 = vpop.f32.mrb[3].mxu0  ;;  %v221_v33 = vadd.f32 %v220_v29, %v104_v22  ;;  %v222_v34 = vpop.f32.mrb[2].mxu1  ;;  %v3111_v21 = vld [vmem:[#allocation5 + $0x308] ss:$16 sps:$4 sm:$0xff]   ;;  %v3125_v27 = vld [vmem:[#allocation5 + $0x34c] ss:$16 sps:$4 sm:$0xff]  }
 0x128   :  { %v182_v36 = vadd.f32 %v181_v32, %v96_v24  ;;  %v3630_v37 = vadd.f32 %v222_v34, %v100_v20  ;;  %v224_v38 = vpop.f32.mrb[3].mxu1  ;;  %v3108_v20 = vld [vmem:[#allocation5 + $0x300] ss:$16 sps:$4 sm:$0xff]   ;;  %v3131_v32 = vld [vmem:[#allocation5 + $0x36c] ss:$16 sps:$4 sm:$0xff]  }
 0x129   :  { %v227_v39 = vpack.c.bf16 %v180_v31, %v176_v30  ;;  %v225_v40 = vadd.f32 %v224_v38, %v104_v22  ;;  %v3116_v22 = vld [vmem:[#allocation5 + $0x324] ss:$16 sps:$4 sm:$0xff]   ;;  %v3114_v24 = vld [vmem:[#allocation5 + $0x320] ss:$16 sps:$4 sm:$0xff]   ;;  %v3123_v30 = vld [vmem:[#allocation5 + $0x348] ss:$16 sps:$4 sm:$0xff]  }
 0x12a   :  { %v228_v41 = vpack.c.bf16 %v182_v36, %v178_v35  ;;  %v229_v42 = vpack.c.bf16 %v3630_v37, %v3628_v28  ;;  %v3120_v29 = vld [vmem:[#allocation5 + $0x340] ss:$16 sps:$4 sm:$0xff]   ;;  %v3128_v31 = vld [vmem:[#allocation5 + $0x364] ss:$16 sps:$4 sm:$0xff]   ;;  %v3129_v34 = vld [vmem:[#allocation5 + $0x368] ss:$16 sps:$4 sm:$0xff]  }
 0x12b   :  { %v230_v43 = vpack.c.bf16 %v225_v40, %v221_v33  ;;  %v231_v47 = vmax.bf16 %v3514_v0, %v227_v39  ;;  %v3126_v33 = vld [vmem:[#allocation5 + $0x360] ss:$16 sps:$4 sm:$0xff]   ;;  %v3134_v35 = vld [vmem:[#allocation5 + $0x384] ss:$16 sps:$4 sm:$0xff]   ;;  %v3137_v36 = vld [vmem:[#allocation5 + $0x38c] ss:$16 sps:$4 sm:$0xff]  }
 0x12c   :  { %v232_v44 = vmax.bf16 %v3514_v0, %v228_v41  ;;  %v3132_v38 = vld [vmem:[#allocation5 + $0x380] ss:$16 sps:$4 sm:$0xff]   ;;  %v3135_v39 = vld [vmem:[#allocation5 + $0x388] ss:$16 sps:$4 sm:$0xff]   ;;  %v3140_v40 = vld [vmem:[#allocation5 + $0x3a4] ss:$16 sps:$4 sm:$0xff]  }
 0x12d   :  { %v234_v50 = vmax.bf16 %v3514_v0, %v230_v43  ;;  %v3143_v41 = vld [vmem:[#allocation5 + $0x3ac] ss:$16 sps:$4 sm:$0xff]   ;;  %v3138_v43 = vld [vmem:[#allocation5 + $0x3a0] ss:$16 sps:$4 sm:$0xff]   ;;  %v3171_v28 = vld [vmem:[#allocation7 + $0x48] ss:$16 sps:$4 sm:$0xff]  }
 0x12e   :  { %1056 = vmatprep.mubr.bf16.mxu0 %v232_v44  ;;  %1142 = vmatprep.mubr.bf16.mxu1 %v232_v44  ;;  %v3141_v44 = vld [vmem:[#allocation5 + $0x3a8] ss:$16 sps:$4 sm:$0xff]   ;;  %v3176_v37 = vld [vmem:[#allocation7 + $0x64] ss:$16 sps:$4 sm:$0xff]  }
 0x12f   :  { %1057 = vmatmul.mubr.bf16.vlgmr.msra.gmra.mrb[4].mxu0 %v231_v47  ;;  %1143 = vmatmul.mubr.bf16.vlgmr.msra.gmra.mrb[4].mxu1 %v231_v47  ;;  %v3144_v47 = vld [vmem:[#allocation5 + $0x3c0] ss:$16 sps:$4 sm:$0xff]  }
 0x130   :  { %1068 = vmatpush1.bf16.msra.mxu0 %v3060_v45  ;;  %1154 = vmatpush1.bf16.msra.mxu1 %v3063_v46  ;;  %v3146_v45 = vld [vmem:[#allocation5 + $0x3c4] ss:$16 sps:$4 sm:$0xff]   ;;  %v3149_v46 = vld [vmem:[#allocation5 + $0x3cc] ss:$16 sps:$4 sm:$0xff]  }
 0x131   :  { %1069 = vmatprep.subr.bf16.mxu0 %v3068_v48  ;;  %1155 = vmatprep.subr.bf16.mxu1 %v3071_v49  ;;  %v3147_v48 = vld [vmem:[#allocation5 + $0x3c8] ss:$16 sps:$4 sm:$0xff]   ;;  %v3152_v49 = vld [vmem:[#allocation5 + $0x3e4] ss:$16 sps:$4 sm:$0xff]  }
 0x132   :  { %1099 = vmatprep.mubr.bf16.mxu0 %v234_v50  ;;  %1185 = vmatprep.mubr.bf16.mxu1 %v234_v50  ;;  %v3155_v50 = vld [vmem:[#allocation5 + $0x3ec] ss:$16 sps:$4 sm:$0xff]  }
 0x134   :  { %1070 = vmatpush1.bf16.msra.mxu0 %v3066_v51  ;;  %1156 = vmatpush1.bf16.msra.mxu1 %v3069_v52  ;;  %v3150_v51 = vld [vmem:[#allocation5 + $0x3e0] ss:$16 sps:$4 sm:$0xff]   ;;  %v3153_v52 = vld [vmem:[#allocation5 + $0x3e8] ss:$16 sps:$4 sm:$0xff]  }
 0x135   :  { %1071 = vmatprep.subr.bf16.mxu0 %v3074_v53  ;;  %1157 = vmatprep.subr.bf16.mxu1 %v3077_v54  ;;  %v3158_v53 = vld [vmem:[#allocation7 + $0x4] ss:$16 sps:$4 sm:$0xff]   ;;  %v3161_v54 = vld [vmem:[#allocation7 + $0xc] ss:$16 sps:$4 sm:$0xff]  }
 0x138   :  { %1072 = vmatpush1.bf16.msra.mxu0 %v3072_v55  ;;  %1158 = vmatpush1.bf16.msra.mxu1 %v3075_v56  ;;  %v3156_v55 = vld [vmem:[#allocation7] ss:$16 sps:$4 sm:$0xff]   ;;  %v3159_v56 = vld [vmem:[#allocation7 + $0x8] ss:$16 sps:$4 sm:$0xff]  }
 0x139   :  { %1073 = vmatprep.subr.bf16.mxu0 %v3080_v57  ;;  %1159 = vmatprep.subr.bf16.mxu1 %v3083_v58  ;;  %v233_v57 = vmax.bf16 %v3514_v0, %v229_v42  ;;  %v3164_v58 = vld [vmem:[#allocation7 + $0x24] ss:$16 sps:$4 sm:$0xff]   ;;  %v3179_v42 = vld [vmem:[#allocation7 + $0x6c] ss:$16 sps:$4 sm:$0xff]  }
 0x13c   :  { %1074 = vmatpush1.bf16.msra.mxu0 %v3078_v59  ;;  %1160 = vmatpush1.bf16.msra.mxu1 %v3081_v60  ;;  %v3167_v59 = vld [vmem:[#allocation7 + $0x2c] ss:$16 sps:$4 sm:$0xff]   ;;  %v3162_v60 = vld [vmem:[#allocation7 + $0x20] ss:$16 sps:$4 sm:$0xff]  }
 0x13d   :  { %1075 = vmatprep.subr.bf16.mxu0 %v3086_v61  ;;  %1161 = vmatprep.subr.bf16.mxu1 %v3089_v62  ;;  %v3165_v61 = vld [vmem:[#allocation7 + $0x28] ss:$16 sps:$4 sm:$0xff]   ;;  %v3170_v62 = vld [vmem:[#allocation7 + $0x44] ss:$16 sps:$4 sm:$0xff]  }
 0x140   :  { %1076 = vmatpush1.bf16.msra.mxu0 %v3084_v63  ;;  %1162 = vmatpush1.bf16.msra.mxu1 %v3087_v1  ;;  %v3173_v63 = vld [vmem:[#allocation7 + $0x4c] ss:$16 sps:$4 sm:$0xff]   ;;  %v3168_v1 = vld [vmem:[#allocation7 + $0x40] ss:$16 sps:$4 sm:$0xff]  }
 0x141   :  { %1077 = vmatprep.subr.bf16.mxu0 %v3092_v2  ;;  %1163 = vmatprep.subr.bf16.mxu1 %v3095_v3  ;;  %v3174_v2 = vld [vmem:[#allocation7 + $0x60] ss:$16 sps:$4 sm:$0xff]   ;;  %v3177_v3 = vld [vmem:[#allocation7 + $0x68] ss:$16 sps:$4 sm:$0xff]  }
 0x144   :  { %1078 = vmatpush1.bf16.msra.mxu0 %v3090_v4  ;;  %1164 = vmatpush1.bf16.msra.mxu1 %v3093_v5  ;;  %v3182_v4 = vld [vmem:[#allocation7 + $0x84] ss:$16 sps:$4 sm:$0xff]   ;;  %v3185_v5 = vld [vmem:[#allocation7 + $0x8c] ss:$16 sps:$4 sm:$0xff]  }
 0x145   :  { %1079 = vmatprep.subr.bf16.mxu0 %v3098_v6  ;;  %1165 = vmatprep.subr.bf16.mxu1 %v3101_v7  ;;  %v3180_v6 = vld [vmem:[#allocation7 + $0x80] ss:$16 sps:$4 sm:$0xff]   ;;  %v3183_v7 = vld [vmem:[#allocation7 + $0x88] ss:$16 sps:$4 sm:$0xff]  }
 0x148   :  { %1080 = vmatpush1.bf16.msra.mxu0 %v3096_v8  ;;  %1166 = vmatpush1.bf16.msra.mxu1 %v3099_v9  ;;  %v3188_v8 = vld [vmem:[#allocation7 + $0xa4] ss:$16 sps:$4 sm:$0xff]   ;;  %v3191_v9 = vld [vmem:[#allocation7 + $0xac] ss:$16 sps:$4 sm:$0xff]  }
 0x149   :  { %1081 = vmatprep.subr.bf16.mxu0 %v3104_v10  ;;  %1167 = vmatprep.subr.bf16.mxu1 %v3107_v11  ;;  %v3186_v10 = vld [vmem:[#allocation7 + $0xa0] ss:$16 sps:$4 sm:$0xff]   ;;  %v3189_v11 = vld [vmem:[#allocation7 + $0xa8] ss:$16 sps:$4 sm:$0xff]  }
 0x14c   :  { %1082 = vmatpush1.bf16.msra.mxu0 %v3102_v12  ;;  %1168 = vmatpush1.bf16.msra.mxu1 %v3105_v13  ;;  %v3194_v12 = vld [vmem:[#allocation7 + $0xc4] ss:$16 sps:$4 sm:$0xff]   ;;  %v3197_v13 = vld [vmem:[#allocation7 + $0xcc] ss:$16 sps:$4 sm:$0xff]  }
 0x14d   :  { %1083 = vmatprep.subr.bf16.mxu0 %v3110_v14  ;;  %1169 = vmatprep.subr.bf16.mxu1 %v3113_v18  ;;  %v3192_v14 = vld [vmem:[#allocation7 + $0xc0] ss:$16 sps:$4 sm:$0xff]   ;;  %v3195_v18 = vld [vmem:[#allocation7 + $0xc8] ss:$16 sps:$4 sm:$0xff]  }
 0x150   :  { %1084 = vmatpush1.bf16.msra.mxu0 %v3108_v20  ;;  %1170 = vmatpush1.bf16.msra.mxu1 %v3111_v21  ;;  %v3200_v20 = vld [vmem:[#allocation7 + $0xe4] ss:$16 sps:$4 sm:$0xff]   ;;  %v3203_v21 = vld [vmem:[#allocation7 + $0xec] ss:$16 sps:$4 sm:$0xff]  }
 0x151   :  { %1085 = vmatprep.subr.bf16.mxu0 %v3116_v22  ;;  %1171 = vmatprep.subr.bf16.mxu1 %v3119_v23  ;;  %v3198_v22 = vld [vmem:[#allocation7 + $0xe0] ss:$16 sps:$4 sm:$0xff]   ;;  %v3201_v23 = vld [vmem:[#allocation7 + $0xe8] ss:$16 sps:$4 sm:$0xff]  }
 0x154   :  { %1086 = vmatpush1.bf16.msra.mxu0 %v3114_v24  ;;  %1172 = vmatpush1.bf16.msra.mxu1 %v3117_v25  ;;  %v3206_v24 = vld [vmem:[#allocation7 + $0x104] ss:$16 sps:$4 sm:$0xff]   ;;  %v3209_v25 = vld [vmem:[#allocation7 + $0x10c] ss:$16 sps:$4 sm:$0xff]  }
 0x155   :  { %1087 = vmatprep.subr.bf16.mxu0 %v3122_v26  ;;  %1173 = vmatprep.subr.bf16.mxu1 %v3125_v27  ;;  %v3204_v26 = vld [vmem:[#allocation7 + $0x100] ss:$16 sps:$4 sm:$0xff]   ;;  %v3207_v27 = vld [vmem:[#allocation7 + $0x108] ss:$16 sps:$4 sm:$0xff]  }
 0x158   :  { %1088 = vmatpush1.bf16.msra.mxu0 %v3120_v29  ;;  %1174 = vmatpush1.bf16.msra.mxu1 %v3123_v30  ;;  %v3212_v29 = vld [vmem:[#allocation7 + $0x124] ss:$16 sps:$4 sm:$0xff]   ;;  %v3215_v30 = vld [vmem:[#allocation7 + $0x12c] ss:$16 sps:$4 sm:$0xff]  }
 0x159   :  { %1089 = vmatprep.subr.bf16.mxu0 %v3128_v31  ;;  %1175 = vmatprep.subr.bf16.mxu1 %v3131_v32  ;;  %v3210_v31 = vld [vmem:[#allocation7 + $0x120] ss:$16 sps:$4 sm:$0xff]   ;;  %v3213_v32 = vld [vmem:[#allocation7 + $0x128] ss:$16 sps:$4 sm:$0xff]  }
 0x15c   :  { %1090 = vmatpush1.bf16.msra.mxu0 %v3126_v33  ;;  %1176 = vmatpush1.bf16.msra.mxu1 %v3129_v34  ;;  %v3218_v33 = vld [vmem:[#allocation7 + $0x144] ss:$16 sps:$4 sm:$0xff]   ;;  %v3221_v34 = vld [vmem:[#allocation7 + $0x14c] ss:$16 sps:$4 sm:$0xff]  }
 0x15d   :  { %1091 = vmatprep.subr.bf16.mxu0 %v3134_v35  ;;  %1177 = vmatprep.subr.bf16.mxu1 %v3137_v36  ;;  %v3216_v35 = vld [vmem:[#allocation7 + $0x140] ss:$16 sps:$4 sm:$0xff]   ;;  %v3219_v36 = vld [vmem:[#allocation7 + $0x148] ss:$16 sps:$4 sm:$0xff]  }
 0x160   :  { %1092 = vmatpush1.bf16.msra.mxu0 %v3132_v38  ;;  %1178 = vmatpush1.bf16.msra.mxu1 %v3135_v39  ;;  %v3224_v38 = vld [vmem:[#allocation7 + $0x164] ss:$16 sps:$4 sm:$0xff]   ;;  %v3227_v39 = vld [vmem:[#allocation7 + $0x16c] ss:$16 sps:$4 sm:$0xff]  }
 0x161   :  { %1093 = vmatprep.subr.bf16.mxu0 %v3140_v40  ;;  %1179 = vmatprep.subr.bf16.mxu1 %v3143_v41  ;;  %v3222_v40 = vld [vmem:[#allocation7 + $0x160] ss:$16 sps:$4 sm:$0xff]   ;;  %v3225_v41 = vld [vmem:[#allocation7 + $0x168] ss:$16 sps:$4 sm:$0xff]  }
 0x164   :  { %1094 = vmatpush1.bf16.msra.mxu0 %v3138_v43  ;;  %1180 = vmatpush1.bf16.msra.mxu1 %v3141_v44  ;;  %v3230_v43 = vld [vmem:[#allocation7 + $0x184] ss:$16 sps:$4 sm:$0xff]   ;;  %v3233_v44 = vld [vmem:[#allocation7 + $0x18c] ss:$16 sps:$4 sm:$0xff]  }
 0x165   :  { %1095 = vmatprep.subr.bf16.mxu0 %v3146_v45  ;;  %1181 = vmatprep.subr.bf16.mxu1 %v3149_v46  ;;  %v3228_v45 = vld [vmem:[#allocation7 + $0x180] ss:$16 sps:$4 sm:$0xff]   ;;  %v3231_v46 = vld [vmem:[#allocation7 + $0x188] ss:$16 sps:$4 sm:$0xff]  }
 0x168   :  { %1096 = vmatpush1.bf16.msra.mxu0 %v3144_v47  ;;  %1182 = vmatpush1.bf16.msra.mxu1 %v3147_v48  ;;  %v3236_v47 = vld [vmem:[#allocation7 + $0x1a4] ss:$16 sps:$4 sm:$0xff]   ;;  %v3239_v48 = vld [vmem:[#allocation7 + $0x1ac] ss:$16 sps:$4 sm:$0xff]  }
 0x169   :  { %1097 = vmatprep.subr.bf16.mxu0 %v3152_v49  ;;  %1183 = vmatprep.subr.bf16.mxu1 %v3155_v50  ;;  %v3234_v49 = vld [vmem:[#allocation7 + $0x1a0] ss:$16 sps:$4 sm:$0xff]   ;;  %v3237_v50 = vld [vmem:[#allocation7 + $0x1a8] ss:$16 sps:$4 sm:$0xff]  }
 0x16c   :  { %1098 = vmatpush1.bf16.msra.mxu0 %v3150_v51  ;;  %1184 = vmatpush1.bf16.msra.mxu1 %v3153_v52  ;;  %v3242_v51 = vld [vmem:[#allocation7 + $0x1c4] ss:$16 sps:$4 sm:$0xff]   ;;  %v3245_v52 = vld [vmem:[#allocation7 + $0x1cc] ss:$16 sps:$4 sm:$0xff]  }
 0x16d   :  { %1993 = vmatprep.subr.bf16.mxu0 %v3158_v53  ;;  %2079 = vmatprep.subr.bf16.mxu1 %v3161_v54  ;;  %v3240_v53 = vld [vmem:[#allocation7 + $0x1c0] ss:$16 sps:$4 sm:$0xff]   ;;  %v3243_v54 = vld [vmem:[#allocation7 + $0x1c8] ss:$16 sps:$4 sm:$0xff]  }
 0x16f   :  { %1100 = vmatmul.mubr.bf16.vlgmr.msra.gmra.mrb[4].mxu0 %v233_v57  ;;  %1186 = vmatmul.mubr.bf16.vlgmr.msra.gmra.mrb[4].mxu1 %v233_v57  ;;  %v3246_v57 = vld [vmem:[#allocation7 + $0x1e0] ss:$16 sps:$4 sm:$0xff]  }
 0x170   :  { %1994 = vmatpush1.bf16.msra.mxu0 %v3156_v55  ;;  %2080 = vmatpush1.bf16.msra.mxu1 %v3159_v56  ;;  %v3248_v55 = vld [vmem:[#allocation7 + $0x1e4] ss:$16 sps:$4 sm:$0xff]   ;;  %v3251_v56 = vld [vmem:[#allocation7 + $0x1ec] ss:$16 sps:$4 sm:$0xff]  }
 0x171   :  { %1995 = vmatprep.subr.bf16.mxu0 %v3164_v58  ;;  %2081 = vmatprep.subr.bf16.mxu1 %v3167_v59  ;;  %v3249_v58 = vld [vmem:[#allocation7 + $0x1e8] ss:$16 sps:$4 sm:$0xff]   ;;  %v3254_v59 = vld [vmem:[#allocation7 + $0x204] ss:$16 sps:$4 sm:$0xff]  }
 0x174   :  { %1996 = vmatpush1.bf16.msra.mxu0 %v3162_v60  ;;  %2082 = vmatpush1.bf16.msra.mxu1 %v3165_v61  ;;  %v3257_v60 = vld [vmem:[#allocation7 + $0x20c] ss:$16 sps:$4 sm:$0xff]  }
 0x175   :  { %1997 = vmatprep.subr.bf16.mxu0 %v3170_v62  ;;  %2083 = vmatprep.subr.bf16.mxu1 %v3173_v63  ;;  %v2564_v61 = vld [vmem:[%s3695_s5 + $0x1] ss:$4 sm:$0xf] }
 0x176   :  { %v367_v62 = vrot.slane %v2564_v61, %v3615_v16  ;;  %v375_v63 = vrot.slane %v2564_v61, %v3613_v15 }
 0x178   :  { %1998 = vmatpush1.bf16.msra.mxu0 %v3168_v1  ;;  %2084 = vmatpush1.bf16.msra.mxu1 %v3171_v28 }
 0x179   :  { %1999 = vmatprep.subr.bf16.mxu0 %v3176_v37  ;;  %2085 = vmatprep.subr.bf16.mxu1 %v3179_v42  ;;  %v371_v37 = vrot.slane %v2564_v61, %v3622_v19  ;;  %v379_v42 = vrot.slane %v2564_v61, %v3617_v17  ;;  %v3305_v61 = vld [vmem:[#allocation7 + $0x30c] ss:$16 sps:$4 sm:$0xff]  }
 0x17c   :  { %2000 = vmatpush1.bf16.msra.mxu0 %v3174_v2  ;;  %2086 = vmatpush1.bf16.msra.mxu1 %v3177_v3 }
 0x17d   :  { %2001 = vmatprep.subr.bf16.mxu0 %v3182_v4  ;;  %2087 = vmatprep.subr.bf16.mxu1 %v3185_v5 }
 0x180   :  { %2002 = vmatpush1.bf16.msra.mxu0 %v3180_v6  ;;  %2088 = vmatpush1.bf16.msra.mxu1 %v3183_v7 }
 0x181   :  { %2003 = vmatprep.subr.bf16.mxu0 %v3188_v8  ;;  %2089 = vmatprep.subr.bf16.mxu1 %v3191_v9 }
 0x184   :  { %2004 = vmatpush1.bf16.msra.mxu0 %v3186_v10  ;;  %2090 = vmatpush1.bf16.msra.mxu1 %v3189_v11 }
 0x185   :  { %2005 = vmatprep.subr.bf16.mxu0 %v3194_v12  ;;  %2091 = vmatprep.subr.bf16.mxu1 %v3197_v13 }
 0x188   :  { %2006 = vmatpush1.bf16.msra.mxu0 %v3192_v14  ;;  %2092 = vmatpush1.bf16.msra.mxu1 %v3195_v18 }
 0x189   :  { %2007 = vmatprep.subr.bf16.mxu0 %v3200_v20  ;;  %2093 = vmatprep.subr.bf16.mxu1 %v3203_v21 }
 0x18c   :  { %2008 = vmatpush1.bf16.msra.mxu0 %v3198_v22  ;;  %2094 = vmatpush1.bf16.msra.mxu1 %v3201_v23 }
 0x18d   :  { %2009 = vmatprep.subr.bf16.mxu0 %v3206_v24  ;;  %2095 = vmatprep.subr.bf16.mxu1 %v3209_v25  ;;  %v3252_v25 = vld [vmem:[#allocation7 + $0x200] ss:$16 sps:$4 sm:$0xff]  }
 0x190   :  { %2010 = vmatpush1.bf16.msra.mxu0 %v3204_v26  ;;  %2096 = vmatpush1.bf16.msra.mxu1 %v3207_v27  ;;  %v3255_v26 = vld [vmem:[#allocation7 + $0x208] ss:$16 sps:$4 sm:$0xff]  }
 0x191   :  { %2011 = vmatprep.subr.bf16.mxu0 %v3212_v29  ;;  %2097 = vmatprep.subr.bf16.mxu1 %v3215_v30  ;;  %v3260_v29 = vld [vmem:[#allocation7 + $0x224] ss:$16 sps:$4 sm:$0xff]   ;;  %v3263_v30 = vld [vmem:[#allocation7 + $0x22c] ss:$16 sps:$4 sm:$0xff]  }
 0x194   :  { %2012 = vmatpush1.bf16.msra.mxu0 %v3210_v31  ;;  %2098 = vmatpush1.bf16.msra.mxu1 %v3213_v32  ;;  %v3258_v32 = vld [vmem:[#allocation7 + $0x220] ss:$16 sps:$4 sm:$0xff]  }
 0x195   :  { %2013 = vmatprep.subr.bf16.mxu0 %v3218_v33  ;;  %2099 = vmatprep.subr.bf16.mxu1 %v3221_v34  ;;  %v3261_v33 = vld [vmem:[#allocation7 + $0x228] ss:$16 sps:$4 sm:$0xff]   ;;  %v3266_v34 = vld [vmem:[#allocation7 + $0x244] ss:$16 sps:$4 sm:$0xff]  }
 0x198   :  { %2014 = vmatpush1.bf16.msra.mxu0 %v3216_v35  ;;  %2100 = vmatpush1.bf16.msra.mxu1 %v3219_v36  ;;  %v3269_v35 = vld [vmem:[#allocation7 + $0x24c] ss:$16 sps:$4 sm:$0xff]   ;;  %v3264_v36 = vld [vmem:[#allocation7 + $0x240] ss:$16 sps:$4 sm:$0xff]  }
 0x199   :  { %2015 = vmatprep.subr.bf16.mxu0 %v3224_v38  ;;  %2101 = vmatprep.subr.bf16.mxu1 %v3227_v39  ;;  %v3267_v38 = vld [vmem:[#allocation7 + $0x248] ss:$16 sps:$4 sm:$0xff]   ;;  %v3272_v39 = vld [vmem:[#allocation7 + $0x264] ss:$16 sps:$4 sm:$0xff]  }
 0x19c   :  { %2016 = vmatpush1.bf16.msra.mxu0 %v3222_v40  ;;  %2102 = vmatpush1.bf16.msra.mxu1 %v3225_v41  ;;  %v3275_v40 = vld [vmem:[#allocation7 + $0x26c] ss:$16 sps:$4 sm:$0xff]   ;;  %v3270_v41 = vld [vmem:[#allocation7 + $0x260] ss:$16 sps:$4 sm:$0xff]  }
 0x19d   :  { %2017 = vmatprep.subr.bf16.mxu0 %v3230_v43  ;;  %2103 = vmatprep.subr.bf16.mxu1 %v3233_v44  ;;  %v3273_v43 = vld [vmem:[#allocation7 + $0x268] ss:$16 sps:$4 sm:$0xff]   ;;  %v3278_v44 = vld [vmem:[#allocation7 + $0x284] ss:$16 sps:$4 sm:$0xff]  }
 0x1a0   :  { %2018 = vmatpush1.bf16.msra.mxu0 %v3228_v45  ;;  %2104 = vmatpush1.bf16.msra.mxu1 %v3231_v46  ;;  %v3281_v45 = vld [vmem:[#allocation7 + $0x28c] ss:$16 sps:$4 sm:$0xff]   ;;  %v3276_v46 = vld [vmem:[#allocation7 + $0x280] ss:$16 sps:$4 sm:$0xff]  }
 0x1a1   :  { %2019 = vmatprep.subr.bf16.mxu0 %v3236_v47  ;;  %2105 = vmatprep.subr.bf16.mxu1 %v3239_v48  ;;  %v3279_v47 = vld [vmem:[#allocation7 + $0x288] ss:$16 sps:$4 sm:$0xff]   ;;  %v3284_v48 = vld [vmem:[#allocation7 + $0x2a4] ss:$16 sps:$4 sm:$0xff]  }
 0x1a4   :  { %2020 = vmatpush1.bf16.msra.mxu0 %v3234_v49  ;;  %2106 = vmatpush1.bf16.msra.mxu1 %v3237_v50  ;;  %v3287_v49 = vld [vmem:[#allocation7 + $0x2ac] ss:$16 sps:$4 sm:$0xff]   ;;  %v3282_v50 = vld [vmem:[#allocation7 + $0x2a0] ss:$16 sps:$4 sm:$0xff]  }
 0x1a5   :  { %2021 = vmatprep.subr.bf16.mxu0 %v3242_v51  ;;  %2107 = vmatprep.subr.bf16.mxu1 %v3245_v52  ;;  %v3285_v51 = vld [vmem:[#allocation7 + $0x2a8] ss:$16 sps:$4 sm:$0xff]   ;;  %v3290_v52 = vld [vmem:[#allocation7 + $0x2c4] ss:$16 sps:$4 sm:$0xff]  }
 0x1a8   :  { %2022 = vmatpush1.bf16.msra.mxu0 %v3240_v53  ;;  %2108 = vmatpush1.bf16.msra.mxu1 %v3243_v54  ;;  %v3293_v53 = vld [vmem:[#allocation7 + $0x2cc] ss:$16 sps:$4 sm:$0xff]   ;;  %v3288_v54 = vld [vmem:[#allocation7 + $0x2c0] ss:$16 sps:$4 sm:$0xff]  }
 0x1a9   :  { %2023 = vmatprep.subr.bf16.mxu0 %v3248_v55  ;;  %2109 = vmatprep.subr.bf16.mxu1 %v3251_v56  ;;  %v3291_v55 = vld [vmem:[#allocation7 + $0x2c8] ss:$16 sps:$4 sm:$0xff]   ;;  %v3296_v56 = vld [vmem:[#allocation7 + $0x2e4] ss:$16 sps:$4 sm:$0xff]  }
 0x1ac   :  { %2024 = vmatpush1.bf16.msra.mxu0 %v3246_v57  ;;  %2110 = vmatpush1.bf16.msra.mxu1 %v3249_v58  ;;  %v3299_v57 = vld [vmem:[#allocation7 + $0x2ec] ss:$16 sps:$4 sm:$0xff]   ;;  %v3294_v58 = vld [vmem:[#allocation7 + $0x2e0] ss:$16 sps:$4 sm:$0xff]  }
 0x1ad   :  { %2036 = vmatprep.subr.bf16.mxu0 %v3254_v59  ;;  %2122 = vmatprep.subr.bf16.mxu1 %v3257_v60  ;;  %v3297_v59 = vld [vmem:[#allocation7 + $0x2e8] ss:$16 sps:$4 sm:$0xff]   ;;  %v3302_v60 = vld [vmem:[#allocation7 + $0x304] ss:$16 sps:$4 sm:$0xff]  }
 0x242   :  { %v1101_v1 = vpop.f32.mrb[4].mxu0  ;;  %v1187_v28 = vpop.f32.mrb[4].mxu1 }
 0x243   :  { %v1103_v2 = vpop.f32.mrb[5].mxu0  ;;  %v1189_v3 = vpop.f32.mrb[5].mxu1  ;;  %v2917_v6 = vadd.f32 %v1101_v1, %v367_v62  ;;  %v3648_v7 = vadd.f32 %v1187_v28, %v375_v63  ;;  %v3308_v1 = vld [vmem:[#allocation7 + $0x324] ss:$16 sps:$4 sm:$0xff]   ;;  %v3311_v28 = vld [vmem:[#allocation7 + $0x32c] ss:$16 sps:$4 sm:$0xff]  }
 0x244   :  { %v1105_v4 = vpop.f32.mrb[6].mxu0  ;;  %v1191_v5 = vpop.f32.mrb[6].mxu1  ;;  %v2918_v12 = vadd.f32 %v1103_v2, %v371_v37  ;;  %v2922_v13 = vadd.f32 %v1189_v3, %v379_v42  ;;  %v3314_v2 = vld [vmem:[#allocation7 + $0x344] ss:$16 sps:$4 sm:$0xff]   ;;  %v3317_v3 = vld [vmem:[#allocation7 + $0x34c] ss:$16 sps:$4 sm:$0xff]  }
 0x245   :  { %v2919_v8 = vadd.f32 %v1105_v4, %v367_v62  ;;  %v3650_v9 = vadd.f32 %v1191_v5, %v375_v63  ;;  %v1107_v10 = vpop.f32.mrb[7].mxu0  ;;  %v1193_v11 = vpop.f32.mrb[7].mxu1  ;;  %v3300_v62 = vld [vmem:[#allocation7 + $0x300] ss:$16 sps:$4 sm:$0xff]   ;;  %v3303_v63 = vld [vmem:[#allocation7 + $0x308] ss:$16 sps:$4 sm:$0xff]  }
 0x246   :  { %v2920_v14 = vadd.f32 %v1107_v10, %v371_v37  ;;  %v2924_v18 = vadd.f32 %v1193_v11, %v379_v42  ;;  %v3306_v37 = vld [vmem:[#allocation7 + $0x320] ss:$16 sps:$4 sm:$0xff]   ;;  %v3309_v42 = vld [vmem:[#allocation7 + $0x328] ss:$16 sps:$4 sm:$0xff]  }
 0x247   :  { %v1196_v20 = vpack.c.bf16 %v2919_v8, %v2917_v6  ;;  %v1198_v21 = vpack.c.bf16 %v3650_v9, %v3648_v7  ;;  %v3312_v4 = vld [vmem:[#allocation7 + $0x340] ss:$16 sps:$4 sm:$0xff]   ;;  %v3315_v5 = vld [vmem:[#allocation7 + $0x348] ss:$16 sps:$4 sm:$0xff]   ;;  %v3320_v6 = vld [vmem:[#allocation7 + $0x364] ss:$16 sps:$4 sm:$0xff]  }
 0x248   :  { %v1197_v22 = vpack.c.bf16 %v2920_v14, %v2918_v12  ;;  %v1199_v23 = vpack.c.bf16 %v2924_v18, %v2922_v13  ;;  %v3323_v8 = vld [vmem:[#allocation7 + $0x36c] ss:$16 sps:$4 sm:$0xff]   ;;  %v3318_v10 = vld [vmem:[#allocation7 + $0x360] ss:$16 sps:$4 sm:$0xff]   ;;  %v3321_v11 = vld [vmem:[#allocation7 + $0x368] ss:$16 sps:$4 sm:$0xff]  }
 0x249   :  { %v1200_v27 = vmax.bf16 %v3514_v0, %v1196_v20  ;;  %v3326_v12 = vld [vmem:[#allocation7 + $0x384] ss:$16 sps:$4 sm:$0xff]   ;;  %v3329_v13 = vld [vmem:[#allocation7 + $0x38c] ss:$16 sps:$4 sm:$0xff]   ;;  %v3324_v14 = vld [vmem:[#allocation7 + $0x380] ss:$16 sps:$4 sm:$0xff]  }
 0x24a   :  { %v1201_v24 = vmax.bf16 %v3514_v0, %v1197_v22  ;;  %v1203_v31 = vmax.bf16 %v3514_v0, %v1199_v23  ;;  %v3327_v18 = vld [vmem:[#allocation7 + $0x388] ss:$16 sps:$4 sm:$0xff]   ;;  %v3332_v20 = vld [vmem:[#allocation7 + $0x3a4] ss:$16 sps:$4 sm:$0xff]   ;;  %v3335_v22 = vld [vmem:[#allocation7 + $0x3ac] ss:$16 sps:$4 sm:$0xff]  }
 0x24b   :  { %v3330_v23 = vld [vmem:[#allocation7 + $0x3a0] ss:$16 sps:$4 sm:$0xff]   ;;  %v3360_v9 = vld [vmem:[#allocation8 + $0x58] sm:$0xff]  }
 0x24c   :  { %2025 = vmatprep.mubr.bf16.mxu0 %v1201_v24  ;;  %2111 = vmatprep.mubr.bf16.mxu1 %v1201_v24  ;;  %v3333_v24 = vld [vmem:[#allocation7 + $0x3a8] ss:$16 sps:$4 sm:$0xff]   ;;  %v3359_v7 = vld [vmem:[#allocation8 + $0x90] sm:$0xff]  }
 0x24d   :  { %2026 = vmatmul.mubr.bf16.vlgmr.msra.gmra.mrb[8].mxu0 %v1200_v27  ;;  %2112 = vmatmul.mubr.bf16.vlgmr.msra.gmra.mrb[8].mxu1 %v1200_v27  ;;  %v3336_v27 = vld [vmem:[#allocation7 + $0x3c0] ss:$16 sps:$4 sm:$0xff]  }
 0x24e   :  { %2037 = vmatpush1.bf16.msra.mxu0 %v3252_v25  ;;  %2123 = vmatpush1.bf16.msra.mxu1 %v3255_v26  ;;  %v3338_v25 = vld [vmem:[#allocation7 + $0x3c4] ss:$16 sps:$4 sm:$0xff]   ;;  %v3341_v26 = vld [vmem:[#allocation7 + $0x3cc] ss:$16 sps:$4 sm:$0xff]  }
 0x24f   :  { %2068 = vmatprep.mubr.bf16.mxu0 %v1203_v31  ;;  %2154 = vmatprep.mubr.bf16.mxu1 %v1203_v31  ;;  %v3347_v31 = vld [vmem:[#allocation7 + $0x3ec] ss:$16 sps:$4 sm:$0xff]  }
 0x250   :  { %2038 = vmatprep.subr.bf16.mxu0 %v3260_v29  ;;  %2124 = vmatprep.subr.bf16.mxu1 %v3263_v30  ;;  %v3339_v29 = vld [vmem:[#allocation7 + $0x3c8] ss:$16 sps:$4 sm:$0xff]   ;;  %v3344_v30 = vld [vmem:[#allocation7 + $0x3e4] ss:$16 sps:$4 sm:$0xff]  }
 0x252   :  { %2039 = vmatpush1.bf16.msra.mxu0 %v3258_v32  ;;  %2125 = vmatpush1.bf16.msra.mxu1 %v3261_v33  ;;  %v3342_v32 = vld [vmem:[#allocation7 + $0x3e0] ss:$16 sps:$4 sm:$0xff]   ;;  %v3345_v33 = vld [vmem:[#allocation7 + $0x3e8] ss:$16 sps:$4 sm:$0xff]  }
 0x253   :  { %2040 = vmatprep.subr.bf16.mxu0 %v3266_v34  ;;  %2126 = vmatprep.subr.bf16.mxu1 %v3269_v35  ;;  %v3348_v34 = vld [vmem:[#allocation8 + $0x40] sm:$0xff]  }
 0x254   :  { %v3349_v35 = vld [vmem:[#allocation8 + $0xc0] sm:$0xff]  }
 0x256   :  { %2041 = vmatpush1.bf16.msra.mxu0 %v3264_v36  ;;  %2127 = vmatpush1.bf16.msra.mxu1 %v3267_v38  ;;  %v3350_v36 = vld [vmem:[#allocation8] sm:$0xff]  }
 0x257   :  { %2042 = vmatprep.subr.bf16.mxu0 %v3272_v39  ;;  %2128 = vmatprep.subr.bf16.mxu1 %v3275_v40  ;;  %v3351_v38 = vld [vmem:[#allocation8 + $0x80] sm:$0xff]   ;;  %v1202_v39 = vmax.bf16 %v3514_v0, %v1198_v21  ;;  %v3352_v40 = vld [vmem:[#allocation8 + $0x48] sm:$0xff]   ;;  %v3361_v21 = vld [vmem:[#allocation8 + $0xd8] sm:$0xff]  }
 0x25a   :  { %2043 = vmatpush1.bf16.msra.mxu0 %v3270_v41  ;;  %2129 = vmatpush1.bf16.msra.mxu1 %v3273_v43  ;;  %v3353_v41 = vld [vmem:[#allocation8 + $0xc8] sm:$0xff]  }
 0x25b   :  { %2044 = vmatprep.subr.bf16.mxu0 %v3278_v44  ;;  %2130 = vmatprep.subr.bf16.mxu1 %v3281_v45  ;;  %v3354_v43 = vld [vmem:[#allocation8 + $0x8] sm:$0xff]   ;;  %v3356_v45 = vld [vmem:[#allocation8 + $0x50] sm:$0xff]  }
 0x25c   :  { %v3355_v44 = vld [vmem:[#allocation8 + $0x88] sm:$0xff]  }
 0x25e   :  { %2045 = vmatpush1.bf16.msra.mxu0 %v3276_v46  ;;  %2131 = vmatpush1.bf16.msra.mxu1 %v3279_v47  ;;  %v3357_v46 = vld [vmem:[#allocation8 + $0xd0] sm:$0xff]  }
 0x25f   :  { %2046 = vmatprep.subr.bf16.mxu0 %v3284_v48  ;;  %2132 = vmatprep.subr.bf16.mxu1 %v3287_v49  ;;  %v3358_v47 = vld [vmem:[#allocation8 + $0x10] sm:$0xff]   ;;  %v3362_v48 = vld [vmem:[#allocation8 + $0x18] sm:$0xff]  }
 0x260   :  { %v3363_v49 = vld [vmem:[#allocation8 + $0x98] sm:$0xff]  }
 0x262   :  { %2047 = vmatpush1.bf16.msra.mxu0 %v3282_v50  ;;  %2133 = vmatpush1.bf16.msra.mxu1 %v3285_v51  ;;  %v3364_v50 = vld [vmem:[#allocation8 + $0x60] sm:$0xff]  }
 0x263   :  { %2048 = vmatprep.subr.bf16.mxu0 %v3290_v52  ;;  %2134 = vmatprep.subr.bf16.mxu1 %v3293_v53  ;;  %v3365_v51 = vld [vmem:[#allocation8 + $0xe0] sm:$0xff]  }
 0x264   :  { %v3366_v52 = vld [vmem:[#allocation8 + $0x20] sm:$0xff]  }
 0x265   :  { %v3367_v53 = vld [vmem:[#allocation8 + $0xa0] sm:$0xff]  }
 0x266   :  { %2049 = vmatpush1.bf16.msra.mxu0 %v3288_v54  ;;  %2135 = vmatpush1.bf16.msra.mxu1 %v3291_v55  ;;  %v3368_v54 = vld [vmem:[#allocation8 + $0x68] sm:$0xff]  }
 0x267   :  { %2050 = vmatprep.subr.bf16.mxu0 %v3296_v56  ;;  %2136 = vmatprep.subr.bf16.mxu1 %v3299_v57  ;;  %v3369_v55 = vld [vmem:[#allocation8 + $0xe8] sm:$0xff]  }
 0x268   :  { %v3370_v56 = vld [vmem:[#allocation8 + $0x28] sm:$0xff]  }
 0x269   :  { %v3371_v57 = vld [vmem:[#allocation8 + $0xa8] sm:$0xff]  }
 0x26a   :  { %2051 = vmatpush1.bf16.msra.mxu0 %v3294_v58  ;;  %2137 = vmatpush1.bf16.msra.mxu1 %v3297_v59  ;;  %v3372_v58 = vld [vmem:[#allocation8 + $0x70] sm:$0xff]  }
 0x26b   :  { %2052 = vmatprep.subr.bf16.mxu0 %v3302_v60  ;;  %2138 = vmatprep.subr.bf16.mxu1 %v3305_v61  ;;  %v3373_v59 = vld [vmem:[#allocation8 + $0xf0] sm:$0xff]  }
 0x26c   :  { %v3374_v60 = vld [vmem:[#allocation8 + $0x30] sm:$0xff]  }
 0x26d   :  { %v3375_v61 = vld [vmem:[#allocation8 + $0xb0] sm:$0xff]  }
 0x26e   :  { %2053 = vmatpush1.bf16.msra.mxu0 %v3300_v62  ;;  %2139 = vmatpush1.bf16.msra.mxu1 %v3303_v63  ;;  %v3376_v62 = vld [vmem:[#allocation8 + $0x78] sm:$0xff]  }
 0x26f   :  { %2054 = vmatprep.subr.bf16.mxu0 %v3308_v1  ;;  %2140 = vmatprep.subr.bf16.mxu1 %v3311_v28  ;;  %v3377_v63 = vld [vmem:[#allocation8 + $0xf8] sm:$0xff]  }
 0x270   :  { %v3378_v1 = vld [vmem:[#allocation8 + $0x38] sm:$0xff]  }
 0x271   :  { %v3379_v28 = vld [vmem:[#allocation8 + $0xb8] sm:$0xff]  }
 0x272   :  { %2055 = vmatpush1.bf16.msra.mxu0 %v3306_v37  ;;  %2141 = vmatpush1.bf16.msra.mxu1 %v3309_v42  ;;  %v2565_v37 = vld [vmem:[%s3695_s5 + $0x2] ss:$4 sm:$0xf] }
 0x273   :  { %2056 = vmatprep.subr.bf16.mxu0 %v3314_v2  ;;  %2142 = vmatprep.subr.bf16.mxu1 %v3317_v3  ;;  %v1336_v42 = vrot.slane %v2565_v37, %v3615_v16  ;;  %v1344_v2 = vrot.slane %v2565_v37, %v3613_v15 }
 0x276   :  { %2057 = vmatpush1.bf16.msra.mxu0 %v3312_v4  ;;  %2143 = vmatpush1.bf16.msra.mxu1 %v3315_v5  ;;  %v1340_v5 = vrot.slane %v2565_v37, %v3622_v19 }
 0x277   :  { %2058 = vmatprep.subr.bf16.mxu0 %v3320_v6  ;;  %2144 = vmatprep.subr.bf16.mxu1 %v3323_v8  ;;  %v1348_v6 = vrot.slane %v2565_v37, %v3617_v17 }
 0x27a   :  { %2059 = vmatpush1.bf16.msra.mxu0 %v3318_v10  ;;  %2145 = vmatpush1.bf16.msra.mxu1 %v3321_v11 }
 0x27b   :  { %2060 = vmatprep.subr.bf16.mxu0 %v3326_v12  ;;  %2146 = vmatprep.subr.bf16.mxu1 %v3329_v13 }
 0x27e   :  { %2061 = vmatpush1.bf16.msra.mxu0 %v3324_v14  ;;  %2147 = vmatpush1.bf16.msra.mxu1 %v3327_v18 }
 0x27f   :  { %2062 = vmatprep.subr.bf16.mxu0 %v3332_v20  ;;  %2148 = vmatprep.subr.bf16.mxu1 %v3335_v22 }
 0x282   :  { %2063 = vmatpush1.bf16.msra.mxu0 %v3330_v23  ;;  %2149 = vmatpush1.bf16.msra.mxu1 %v3333_v24 }
 0x283   :  { %2064 = vmatprep.subr.bf16.mxu0 %v3338_v25  ;;  %2150 = vmatprep.subr.bf16.mxu1 %v3341_v26 }
 0x286   :  { %2065 = vmatpush1.bf16.msra.mxu0 %v3336_v27  ;;  %2151 = vmatpush1.bf16.msra.mxu1 %v3339_v29 }
 0x287   :  { %2066 = vmatprep.subr.bf16.mxu0 %v3344_v30  ;;  %2152 = vmatprep.subr.bf16.mxu1 %v3347_v31 }
 0x28a   :  { %2067 = vmatpush1.bf16.msra.mxu0 %v3342_v32  ;;  %2153 = vmatpush1.bf16.msra.mxu1 %v3345_v33 }
 0x28b   :  { %2873 = vmatprep.subr.bf16.mxu0 %v3348_v34  ;;  %2895 = vmatprep.subr.bf16.mxu1 %v3349_v35  ;;  %v2831_v35 = vld [vmem:[%s3695_s5 + $0x3] ss:$0 sm:$0xff]  ;;  %s3515_s5 = smov [#allocation10]  }
 0x28c   :  { %s2550_s29 = sshll.u32 %s3515_s5, 4  ;;  %s2551_s29 = int_to_ptr.vmem [resolvable:$true] %s2550_s29 }
 0x28d   :  { %2069 = vmatmul.mubr.bf16.vlgmr.msra.gmra.mrb[8].mxu0 %v1202_v39  ;;  %2155 = vmatmul.mubr.bf16.vlgmr.msra.gmra.mrb[8].mxu1 %v1202_v39  ;;  %s3476_s30 = scalar_lea.vmem %s2551_s29, 128  ;;  %p3481_p5 = scmp.lt.s32.totalorder %s2551_s29, %s2551_s29 }
 0x28e   :  { %2874 = vmatpush3.bf16.msra.mxu0 %v3350_v36  ;;  %2896 = vmatpush3.bf16.msra.mxu1 %v3351_v38  ;;  %p3477_p4 = scmp.ne.s32.totalorder %s2551_s29, %s3476_s30  ;;  %p3482_p6 = scmp.lt.s32.totalorder %s3476_s30, %s3476_s30 }
 0x28f   :  { %2875 = vmatprep.subr.bf16.mxu0 %v3352_v40  ;;  %2897 = vmatprep.subr.bf16.mxu1 %v3353_v41 }
 0x290   :  { %p3483_p7 = por %p3482_p6, %p3481_p5 }
 0x292   :  { %2876 = vmatpush3.bf16.msra.mxu0 %v3354_v43  ;;  %2898 = vmatpush3.bf16.msra.mxu1 %v3355_v44  ;;  %p3484_p8 = pnand %p3483_p7, %p3477_p4 }
 0x293   :  { %2877 = vmatprep.subr.bf16.mxu0 %v3356_v45  ;;  %2899 = vmatprep.subr.bf16.mxu1 %v3357_v46 }
 0x296   :  { %2878 = vmatpush3.bf16.msra.mxu0 %v3358_v47  ;;  %2900 = vmatpush3.bf16.msra.mxu1 %v3359_v7 }
 0x297   :  { %2879 = vmatprep.subr.bf16.mxu0 %v3360_v9  ;;  %2901 = vmatprep.subr.bf16.mxu1 %v3361_v21 }
 0x29a   :  { %2880 = vmatpush3.bf16.msra.mxu0 %v3362_v48  ;;  %2902 = vmatpush3.bf16.msra.mxu1 %v3363_v49 }
 0x29b   :  { %2881 = vmatprep.subr.bf16.mxu0 %v3364_v50  ;;  %2903 = vmatprep.subr.bf16.mxu1 %v3365_v51 }
 0x29e   :  { %2882 = vmatpush3.bf16.msra.mxu0 %v3366_v52  ;;  %2904 = vmatpush3.bf16.msra.mxu1 %v3367_v53 }
 0x29f   :  { %2883 = vmatprep.subr.bf16.mxu0 %v3368_v54  ;;  %2905 = vmatprep.subr.bf16.mxu1 %v3369_v55 }
 0x2a2   :  { %2884 = vmatpush3.bf16.msra.mxu0 %v3370_v56  ;;  %2906 = vmatpush3.bf16.msra.mxu1 %v3371_v57 }
 0x2a3   :  { %2885 = vmatprep.subr.bf16.mxu0 %v3372_v58  ;;  %2907 = vmatprep.subr.bf16.mxu1 %v3373_v59 }
 0x2a6   :  { %2886 = vmatpush3.bf16.msra.mxu0 %v3374_v60  ;;  %2908 = vmatpush3.bf16.msra.mxu1 %v3375_v61 }
 0x2a7   :  { %2887 = vmatprep.subr.bf16.mxu0 %v3376_v62  ;;  %2909 = vmatprep.subr.bf16.mxu1 %v3377_v63 }
 0x2aa   :  { %2888 = vmatpush3.bf16.msra.mxu0 %v3378_v1  ;;  %2910 = vmatpush3.bf16.msra.mxu1 %v3379_v28 }
 0x360   :  { %v2070_v3 = vpop.f32.mrb[8].mxu0  ;;  %v2156_v4 = vpop.f32.mrb[8].mxu1 }
 0x361   :  { %v2072_v8 = vpop.f32.mrb[9].mxu0  ;;  %v2158_v10 = vpop.f32.mrb[9].mxu1  ;;  %v2925_v13 = vadd.f32 %v2070_v3, %v1336_v42  ;;  %v2929_v14 = vadd.f32 %v2156_v4, %v1344_v2 }
 0x362   :  { %v2074_v11 = vpop.f32.mrb[10].mxu0  ;;  %v2160_v12 = vpop.f32.mrb[10].mxu1  ;;  %v2926_v24 = vadd.f32 %v2072_v8, %v1340_v5  ;;  %v2930_v16 = vadd.f32 %v2158_v10, %v1348_v6 }
 0x363   :  { %v2927_v18 = vadd.f32 %v2074_v11, %v1336_v42  ;;  %v2931_v20 = vadd.f32 %v2160_v12, %v1344_v2  ;;  %v2076_v22 = vpop.f32.mrb[11].mxu0  ;;  %v2162_v23 = vpop.f32.mrb[11].mxu1 }
 0x364   :  { %v2928_v25 = vadd.f32 %v2076_v22, %v1340_v5  ;;  %v2932_v15 = vadd.f32 %v2162_v23, %v1348_v6 }
 0x365   :  { %v2165_v26 = vpack.c.bf16 %v2927_v18, %v2925_v13  ;;  %v2167_v27 = vpack.c.bf16 %v2931_v20, %v2929_v14 }
 0x366   :  { %v2166_v29 = vpack.c.bf16 %v2928_v25, %v2926_v24  ;;  %v2168_v19 = vpack.c.bf16 %v2932_v15, %v2930_v16 }
 0x367   :  { %v2169_v31 = vmax.bf16 %v3514_v0, %v2165_v26  ;;  %v2171_v32 = vmax.bf16 %v3514_v0, %v2167_v27 }
 0x368   :  { %v2170_v17 = vmax.bf16 %v3514_v0, %v2166_v29  ;;  %v2172_v30 = vmax.bf16 %v3514_v0, %v2168_v19 }
 0x36a   :  { %2465 = vmatprep.mubr.bf16.mxu0 %v2170_v17  ;;  %2506 = vmatprep.mubr.bf16.mxu1 %v2172_v30 }
 0x36b   :  { %2466 = vmatmul.mubr.bf16.vlgmr.msra.gmra.mrb[12].mxu0 %v2169_v31  ;;  %2507 = vmatmul.mubr.bf16.vlgmr.msra.gmra.mrb[12].mxu1 %v2171_v32 }
 0x43e   :  { %v2889_v33 = vpop.f32.mrb[12].mxu0  ;;  %v2911_v34 = vpop.f32.mrb[12].mxu1 }
 0x43f   :  { %v2890_v36 = vpop.f32.mrb[13].mxu0  ;;  %v2912_v38 = vpop.f32.mrb[13].mxu1 }
 0x440   :  { %v2891_v39 = vadd.f32 %v2890_v36, %v2889_v33  ;;  %v2913_v40 = vadd.f32 %v2912_v38, %v2911_v34  ;;  %v2892_v41 = vpop.f32.mrb[14].mxu0  ;;  %v2914_v43 = vpop.f32.mrb[14].mxu1 }
 0x441   :  { %v2893_v44 = vpop.f32.mrb[15].mxu0  ;;  %v2915_v45 = vpop.f32.mrb[15].mxu1 }
 0x442   :  { %v2468_v46 = vadd.f32 %v2891_v39, %v2831_v35  ;;  %v2894_v0 = vadd.f32 %v2893_v44, %v2892_v41  ;;  %v2916_v47 = vadd.f32 %v2915_v45, %v2914_v43 }
 0x444   :  { %v2471_v7 = vadd.f32 %v2894_v0, %v2831_v35  ;;  %v2509_v9 = vadd.f32 %v2913_v40, %v2468_v46 }
 0x446   :  { %2515 = vmax.xlane.f32.xlu0 %v2509_v9  ;;  %v2512_v21 = vadd.f32 %v2916_v47, %v2471_v7 }
 0x44a   :  { %2517 = vmax.xlane.f32.xlu0 %v2512_v21 }
 0x4d3   :  { %v2516_v48 = vpop.xlane.xlu0 %2515 }
 0x4d4   :  { %v2519_v49 = vsub.f32 %v2509_v9, %v2516_v48 }
 0x4d6   :  { %v2521_v50 = vmul.f32 1.442695, %v2519_v49 }
 0x4d7   :  { %v2518_v51 = vpop.xlane.xlu0 %2517 }
 0x4d8   :  { %3380 = vpow2.f32 %v2521_v50  ;;  %v2520_v52 = vsub.f32 %v2512_v21, %v2518_v51 }
 0x4da   :  { %v2523_v53 = vmul.f32 1.442695, %v2520_v52 }
 0x4dc   :  { %3382 = vpow2.f32 %v2523_v53 }
 0x4e2   :  { %v3381_v54 = vpop.eup %3380 }
 0x4e3   :  { %2525 = vadd.xlane.f32.xlu1 %v3381_v54 }
 0x4e6   :  { %v3383_v55 = vpop.eup %3382 }
 0x4e7   :  { %2527 = vadd.xlane.f32.xlu1 %v3383_v55 }
 0x570   :  { %v2526_v56 = vpop.xlane.xlu1 %2525 }
 0x571   :  { %3384 = vrcp.f32 %v2526_v56 }
 0x574   :  { %v2528_v57 = vpop.xlane.xlu1 %2527 }
 0x575   :  { %3386 = vrcp.f32 %v2528_v57 }
 0x57b   :  { %v3385_v58 = vpop.eup %3384 }
 0x57c   :  { %v2533_v60 = vmul.f32 %v3385_v58, %v3381_v54 }
 0x57f   :  { %v3387_v59 = vpop.eup %3386 }
 0x580   :  { %v2534_v61 = vmul.f32 %v3387_v59, %v3383_v55 }
 0x582   :  { %v2871_v62 = vpack.c.bf16 %v2534_v61, %v2533_v60 }
 0x584   :  { %2872 = vst [vmem:[#allocation10] sm:$0xff] %v2871_v62  }
 0x585   :  { %3487 = shalt.err (!%p3484_p8)
}
 0x586   :  { %s3488_s10 = scalar_lea.hbm %s3696_s6, 128 }
 0x587   :  { %p3489_p9 = scmp.ne.s32.totalorder %s3696_s6, %s3488_s10  ;;  %p3492_p10 = scmp.lt.u32.totalorder %s3488_s10, %s3696_s6 }
 0x589   :  { %p3494_p11 = pnand %p3492_p10, %p3489_p9 }
 0x58b   :  { %3497 = shalt.err (!%p3494_p11)
}
 0x58c   :  { %2556 = dma.vmem_to_hbm [thread:$0]  %s2551_s29, 128, %s3696_s6, [#allocation4], %s3512_s3, %s3512_s3, %s3513_s7  }
 0x58d   :  { %3504 = dma.done.wait [#allocation4], 128  }
 0x58e   :  { %3505 = vsyncadd [#allocation4], 4294967168 }
 0x58f   :  { %2560 = vsyncpa [#allocation3], 1 }
 0x590   :  { %2561 = vsyncpa [#allocation6], 1 }
 0x591   :  { %2562 = vsyncpa [#allocation9], 1 }
 0x592   :  { %2563 = vsyncpa [#allocation4], 1 }

</bundles_post_ra>
